<compile_context>
chip_gen: v5e
topology: v5e:2x2
jax: 0.10.0
libtpu: 0.0.40
codegen_flags: <defaults>
</compile_context>

<pallas_src>
import functools

import jax
import jax.numpy as jnp
from jax import lax
from jax.experimental import pallas as pl
from jax.experimental.pallas import tpu as pltpu

_BN_EPS = 1e-5


# ------------------------------ Pallas kernel ------------------------------ #
def _shift_lanes(x, d):
    """y[:, p] = x[:, p + d] with zero fill out of range (static d)."""
    if d == 0:
        return x
    cols = x.shape[1]
    z = jnp.zeros((x.shape[0], abs(d)), x.dtype)
    if d > 0:
        return jnp.concatenate([x[:, d:], z], axis=1)
    return jnp.concatenate([z, x[:, :cols + d]], axis=1)


def _residual_stack_kernel(x_ref, mask_ref, wblk_ref, sblk_ref, wca_ref, bca_ref,
                           out_ref, act_ref, *, wp):
    """6 x BasicBlock + conv_alone for ONE image, fully VMEM-resident.

    x_ref    : (1, Cout, Mp)        bf16  zero-halo padded activation, flat spatial
    mask_ref : (1, Mp)              f32   1.0 on interior pixels, 0.0 on the halo
    wblk_ref : (6, Cout, 9*Cout)    bf16  block conv weights (BN scale folded)
    sblk_ref : (6, Cout, 1)         f32   folded BN shift per block
    wca_ref  : (Cout, 9*Cout)       bf16  conv_alone weight
    bca_ref  : (Cout, 1)            f32   conv_alone bias
    out_ref  : (1, Cout, Mp)        f32   padded-flat output (NCHW after reshape)
    act_ref  : (Cout, Mp)           bf16  resident activation scratch
    `wp` = padded width (ow + 2); Mp = (oh + 2) * wp.
    """
    act_ref[...] = x_ref[0]                      # copy padded input (halo is zero)
    mask = mask_ref[...]                         # (1, Mp) f32

    def conv3x3(w_big):
        # 'same' 3x3 conv of the resident padded activation: build the
        # (9*Cout, Mp) patch matrix from 9 lane-shifted views (no masked
        # per-tap stores) and run ONE MXU matmul with K = 9*Cout, lanes = Mp.
        x = act_ref[...]                         # (Cout, Mp) bf16
        shifted = []
        for ki in range(3):
            for kj in range(3):
                d = (ki - 1) * wp + (kj - 1)
                shifted.append(_shift_lanes(x, d))
        patches = jnp.concatenate(shifted, axis=0)          # (9*Cout, Mp) bf16
        return jnp.dot(w_big, patches, preferred_element_type=jnp.float32)

    n_blocks = wblk_ref.shape[0]
    for layer in range(n_blocks):
        # BasicBlock: x + LeakyReLU_0.2(BN(conv(x))); BN scale folded into the
        # bf16 weight rows, so the epilogue is just "+ shift".
        y = conv3x3(wblk_ref[layer]) + sblk_ref[layer]      # (Cout, Mp) f32
        y = jnp.where(y > 0, y, 0.2 * y)                    # LeakyReLU(0.2)
        # residual add in f32; mask keeps the zero halo intact across layers
        x_new = act_ref[...].astype(jnp.float32) + mask * y
        act_ref[...] = x_new.astype(jnp.bfloat16)

    # conv_alone: plain conv + bias, stored lane-dense straight to the output.
    y = conv3x3(wca_ref[...]) + bca_ref[...]
    out_ref[0] = y


# ----------------------------- forward wrapper ----------------------------- #
def feature_extractor_forward(img_nchw, prep):
    """FeatureExtractor.forward: (N, Cin, H, W) -> (N, Cout, H/2**k, W/2**k)."""
    n = img_nchw.shape[0]
    dn = ("NCHW", "OIHW", "NCHW")

    # k downsample convs (5x5, stride 2, pad 2): negligible FLOPs, run by XLA
    # so the fused kernel only handles the Cout-channel residual stack.
    x = img_nchw
    for (w, b) in prep["downsample"]:
        x = lax.conv_general_dilated(x, w, (2, 2), [(2, 2), (2, 2)],
                                     dimension_numbers=dn)
        x = x + b[None, :, None, None]

    cout, oh, ow = x.shape[1], x.shape[2], x.shape[3]
    hp, wp = oh + 2, ow + 2
    mp = hp * wp

    # 1-px zero halo for the 3x3 stack, flattened spatial, bf16 MXU operands.
    xp = jnp.pad(x, ((0, 0), (0, 0), (1, 1), (1, 1)))
    xflat = xp.reshape(n, cout, mp).astype(jnp.bfloat16)

    # Interior mask: keeps the halo of the resident activation at zero.
    mask = jnp.zeros((hp, wp), jnp.float32).at[1:1 + oh, 1:1 + ow].set(1.0)
    mask = mask.reshape(1, mp)

    kernel = functools.partial(_residual_stack_kernel, wp=wp)
    out = pl.pallas_call(
        kernel,
        out_shape=jax.ShapeDtypeStruct((n, cout, mp), jnp.float32),
        grid=(n,),
        in_specs=[
            pl.BlockSpec((1, cout, mp), lambda i: (i, 0, 0)),
            pl.BlockSpec((1, mp), lambda i: (0, 0)),
            pl.BlockSpec(prep["wblk"].shape, lambda i: (0, 0, 0)),
            pl.BlockSpec(prep["sblk"].shape, lambda i: (0, 0, 0)),
            pl.BlockSpec(prep["wca"].shape, lambda i: (0, 0)),
            pl.BlockSpec(prep["bca"].shape, lambda i: (0, 0)),
        ],
        out_specs=pl.BlockSpec((1, cout, mp), lambda i: (i, 0, 0)),
        scratch_shapes=[pltpu.VMEM((cout, mp), jnp.bfloat16)],
        compiler_params=pltpu.CompilerParams(
            dimension_semantics=("parallel",),          # megacore over batch
            vmem_limit_bytes=64 * 1024 * 1024),
    )(xflat, mask, prep["wblk"], prep["sblk"], prep["wca"], prep["bca"])

    # (n, Cout, Hp*Wp) is already channels-first: reshape and drop the halo.
    return out.reshape(n, cout, hp, wp)[:, :, 1:1 + oh, 1:1 + ow]


# --------------------------- parameter handling ---------------------------- #
def init_params(key, k=1, in_channel=3, out_channel=32):
    """Parameters in the PyTorch layout (Conv2d weight: (Cout, Cin, KH, KW))."""
    params = {"downsample": [], "blocks": [], "conv_alone": None}
    cin = in_channel
    for _ in range(k):
        key, k1, k2 = jax.random.split(key, 3)
        w = jax.random.normal(k1, (out_channel, cin, 5, 5), jnp.float32) * 0.05
        b = jax.random.normal(k2, (out_channel,), jnp.float32) * 0.05
        params["downsample"].append((w, b))
        cin = out_channel
    for _ in range(6):
        key, k1, k2, k3 = jax.random.split(key, 4)
        w = jax.random.normal(k1, (out_channel, out_channel, 3, 3), jnp.float32) * 0.05
        gamma = 1.0 + 0.1 * jax.random.normal(k2, (out_channel,), jnp.float32)
        beta = 0.1 * jax.random.normal(k3, (out_channel,), jnp.float32)
        rmean = jnp.zeros((out_channel,), jnp.float32)
        rvar = jnp.ones((out_channel,), jnp.float32)
        params["blocks"].append((w, gamma, beta, rmean, rvar))
    key, k1, k2 = jax.random.split(key, 3)
    w = jax.random.normal(k1, (out_channel, out_channel, 3, 3), jnp.float32) * 0.05
    b = jax.random.normal(k2, (out_channel,), jnp.float32) * 0.05
    params["conv_alone"] = (w, b)
    return params


def _conv3x3_to_gemm_weight(w, scale=None):
    """torch (O, I, 3, 3) -> (O, 9*I) with columns in (tap, in-channel) order,
    matching the kernel's patch matrix; optional BN scale folded into rows."""
    o, i, kh, kw = w.shape
    taps = jnp.transpose(w, (2, 3, 0, 1)).reshape(kh * kw, o, i)    # (9, O, I)
    if scale is not None:
        taps = taps * scale[None, :, None]
    return jnp.transpose(taps, (1, 0, 2)).reshape(o, kh * kw * i)   # (O, 9*I)


def prepare_params(params):
    """One-time transform at init (not per forward): GEMM-layout bf16 weights,
    inference-mode BN folded (scale into rows, shift kept)."""
    # TODO(synk): training-mode BatchNorm (batch statistics) is not implemented.
    wblk, sblk = [], []
    for (w, gamma, beta, rmean, rvar) in params["blocks"]:
        scale = gamma / jnp.sqrt(rvar + _BN_EPS)
        shift = beta - rmean * scale
        wblk.append(_conv3x3_to_gemm_weight(w, scale).astype(jnp.bfloat16))
        sblk.append(shift.reshape(-1, 1))
    w_ca, b_ca = params["conv_alone"]
    return {
        "downsample": [(w.astype(jnp.float32), b.astype(jnp.float32))
                       for (w, b) in params["downsample"]],
        "wblk": jnp.stack(wblk, axis=0),                             # (6, C, 9C) bf16
        "sblk": jnp.stack(sblk, axis=0).astype(jnp.float32),         # (6, C, 1)  f32
        "wca": _conv3x3_to_gemm_weight(w_ca).astype(jnp.bfloat16),   # (C, 9C)    bf16
        "bca": b_ca.reshape(-1, 1).astype(jnp.float32),              # (C, 1)     f32
    }


# ---------------------- pure-JAX reference (f32, XLA) ---------------------- #
def _reference_forward(img, params):
    dn = ("NCHW", "OIHW", "NCHW")
    x = img
    for (w, b) in params["downsample"]:
        x = lax.conv_general_dilated(x, w, (2, 2), [(2, 2), (2, 2)],
                                     dimension_numbers=dn)
        x = x + b[None, :, None, None]
    for (w, gamma, beta, rmean, rvar) in params["blocks"]:
        y = lax.conv_general_dilated(x, w, (1, 1), [(1, 1), (1, 1)],
                                     dimension_numbers=dn)
        scale = gamma / jnp.sqrt(rvar + _BN_EPS)
        shift = beta - rmean * scale
        y = y * scale[None, :, None, None] + shift[None, :, None, None]
        y = jnp.where(y > 0, y, 0.2 * y)
        x = x + y
    w, b = params["conv_alone"]
    x = lax.conv_general_dilated(x, w, (1, 1), [(1, 1), (1, 1)],
                                 dimension_numbers=dn)
    return x + b[None, :, None, None]


if __name__ == "__main__":
    key = jax.random.PRNGKey(0)
    key, kimg = jax.random.split(key)
    # PyTorch-style NCHW input: batch=2, in_channel=3, 16x16
    img = jax.random.normal(kimg, (2, 3, 16, 16), jnp.float32)

    params = init_params(jax.random.PRNGKey(1), k=1, in_channel=3, out_channel=32)
    prep = prepare_params(params)

    fwd = jax.jit(feature_extractor_forward)
    out = jax.block_until_ready(fwd(img, prep))

    # k=1 downsample with stride 2: 16x16 -> 8x8, 32 output channels
    assert out.shape == (2, 32, 8, 8), out.shape
    assert bool(jnp.all(jnp.isfinite(out)))

    # numerical check vs pure-JAX f32 reference (kernel matmuls/activations bf16)
    ref = _reference_forward(img, params)
    rel_err = jnp.linalg.norm(out - ref) / jnp.linalg.norm(ref)
    assert float(rel_err) < 0.1, float(rel_err)

    print("KERNEL_OK")
</pallas_src>

<mosaic_0001>
module attributes {stable_mosaic.version = 11 : i64} {
  func.func @_residual_stack_kernel(%arg0: i32, %arg1: memref<1x32x100xbf16, #tpu.memory_space<vmem>>, %arg2: memref<1x100xf32, #tpu.memory_space<vmem>>, %arg3: memref<6x32x288xbf16, #tpu.memory_space<vmem>>, %arg4: memref<6x32x1xf32, #tpu.memory_space<vmem>>, %arg5: memref<32x288xbf16, #tpu.memory_space<vmem>>, %arg6: memref<32x1xf32, #tpu.memory_space<vmem>>, %arg7: memref<1x32x100xf32, #tpu.memory_space<vmem>>, %arg8: memref<32x100xbf16, #tpu.memory_space<vmem>>) attributes {dimension_semantics = [#tpu.dimension_semantics<parallel>], iteration_bounds = array<i64: 2>, scalar_prefetch = 0 : i64, scratch_operands = 1 : i64, tpu.core_type = #tpu.core_type<tc>, window_params = [{transform_indices = @transform_0, window_bounds = array<i64: 1, 32, 100>}, {pipeline_mode = #tpu.pipeline_mode<synchronous>, transform_indices = @transform_1, window_bounds = array<i64: 1, 100>}, {pipeline_mode = #tpu.pipeline_mode<synchronous>, transform_indices = @transform_2, window_bounds = array<i64: 6, 32, 288>}, {pipeline_mode = #tpu.pipeline_mode<synchronous>, transform_indices = @transform_3, window_bounds = array<i64: 6, 32, 1>}, {pipeline_mode = #tpu.pipeline_mode<synchronous>, transform_indices = @transform_4, window_bounds = array<i64: 32, 288>}, {pipeline_mode = #tpu.pipeline_mode<synchronous>, transform_indices = @transform_5, window_bounds = array<i64: 32, 1>}, {transform_indices = @transform_6, window_bounds = array<i64: 1, 32, 100>}]} {
    %c0 = arith.constant 0 : index
    %c0_0 = arith.constant 0 : index
    %c0_1 = arith.constant 0 : index
    %0 = vector.load %arg1[%c0, %c0_0, %c0_1] : memref<1x32x100xbf16, #tpu.memory_space<vmem>>, vector<1x32x100xbf16>
    %1 = vector.shape_cast %0 : vector<1x32x100xbf16> to vector<32x100xbf16>
    %c0_2 = arith.constant 0 : index
    %c0_3 = arith.constant 0 : index
    %2 = vector.load %arg8[%c0_2, %c0_3] : memref<32x100xbf16, #tpu.memory_space<vmem>>, vector<32x100xbf16>
    tpu.vector_store %arg8[%c0_2, %c0_3], %1 {strides = array<i32>} : memref<32x100xbf16, #tpu.memory_space<vmem>>, vector<32x100xbf16>,
    %c0_4 = arith.constant 0 : index
    %c0_5 = arith.constant 0 : index
    %3 = vector.load %arg2[%c0_4, %c0_5] : memref<1x100xf32, #tpu.memory_space<vmem>>, vector<1x100xf32>
    %c0_6 = arith.constant 0 : index
    %c0_7 = arith.constant 0 : index
    %c0_8 = arith.constant 0 : index
    %4 = vector.load %arg3[%c0_6, %c0_7, %c0_8] : memref<6x32x288xbf16, #tpu.memory_space<vmem>>, vector<1x32x288xbf16>
    %5 = vector.shape_cast %4 : vector<1x32x288xbf16> to vector<32x288xbf16>
    %c0_9 = arith.constant 0 : index
    %c0_10 = arith.constant 0 : index
    %6 = vector.load %arg8[%c0_9, %c0_10] : memref<32x100xbf16, #tpu.memory_space<vmem>>, vector<32x100xbf16>
    %cst = arith.constant 0.000000e+00 : bf16
    %7 = vector.broadcast %cst : bf16 to vector<32x11xbf16>
    %8 = vector.extract_strided_slice %6 {offsets = [0, 0], sizes = [32, 89], strides = [1, 1]} : vector<32x100xbf16> to vector<32x89xbf16>
    %9 = tpu.concatenate %7, %8 in 1 : vector<32x11xbf16>, vector<32x89xbf16> -> vector<32x100xbf16>
    %cst_11 = arith.constant 0.000000e+00 : bf16
    %10 = vector.broadcast %cst_11 : bf16 to vector<32x10xbf16>
    %11 = vector.extract_strided_slice %6 {offsets = [0, 0], sizes = [32, 90], strides = [1, 1]} : vector<32x100xbf16> to vector<32x90xbf16>
    %12 = tpu.concatenate %10, %11 in 1 : vector<32x10xbf16>, vector<32x90xbf16> -> vector<32x100xbf16>
    %cst_12 = arith.constant 0.000000e+00 : bf16
    %13 = vector.broadcast %cst_12 : bf16 to vector<32x9xbf16>
    %14 = vector.extract_strided_slice %6 {offsets = [0, 0], sizes = [32, 91], strides = [1, 1]} : vector<32x100xbf16> to vector<32x91xbf16>
    %15 = tpu.concatenate %13, %14 in 1 : vector<32x9xbf16>, vector<32x91xbf16> -> vector<32x100xbf16>
    %cst_13 = arith.constant 0.000000e+00 : bf16
    %16 = vector.broadcast %cst_13 : bf16 to vector<32x1xbf16>
    %17 = vector.extract_strided_slice %6 {offsets = [0, 0], sizes = [32, 99], strides = [1, 1]} : vector<32x100xbf16> to vector<32x99xbf16>
    %18 = tpu.concatenate %16, %17 in 1 : vector<32x1xbf16>, vector<32x99xbf16> -> vector<32x100xbf16>
    %cst_14 = arith.constant 0.000000e+00 : bf16
    %19 = vector.broadcast %cst_14 : bf16 to vector<32x1xbf16>
    %20 = vector.extract_strided_slice %6 {offsets = [0, 1], sizes = [32, 99], strides = [1, 1]} : vector<32x100xbf16> to vector<32x99xbf16>
    %21 = tpu.concatenate %20, %19 in 1 : vector<32x99xbf16>, vector<32x1xbf16> -> vector<32x100xbf16>
    %cst_15 = arith.constant 0.000000e+00 : bf16
    %22 = vector.broadcast %cst_15 : bf16 to vector<32x9xbf16>
    %23 = vector.extract_strided_slice %6 {offsets = [0, 9], sizes = [32, 91], strides = [1, 1]} : vector<32x100xbf16> to vector<32x91xbf16>
    %24 = tpu.concatenate %23, %22 in 1 : vector<32x91xbf16>, vector<32x9xbf16> -> vector<32x100xbf16>
    %cst_16 = arith.constant 0.000000e+00 : bf16
    %25 = vector.broadcast %cst_16 : bf16 to vector<32x10xbf16>
    %26 = vector.extract_strided_slice %6 {offsets = [0, 10], sizes = [32, 90], strides = [1, 1]} : vector<32x100xbf16> to vector<32x90xbf16>
    %27 = tpu.concatenate %26, %25 in 1 : vector<32x90xbf16>, vector<32x10xbf16> -> vector<32x100xbf16>
    %cst_17 = arith.constant 0.000000e+00 : bf16
    %28 = vector.broadcast %cst_17 : bf16 to vector<32x11xbf16>
    %29 = vector.extract_strided_slice %6 {offsets = [0, 11], sizes = [32, 89], strides = [1, 1]} : vector<32x100xbf16> to vector<32x89xbf16>
    %30 = tpu.concatenate %29, %28 in 1 : vector<32x89xbf16>, vector<32x11xbf16> -> vector<32x100xbf16>
    %31 = tpu.concatenate %9, %12, %15, %18, %6, %21, %24, %27, %30 in 0 : vector<32x100xbf16>, vector<32x100xbf16>, vector<32x100xbf16>, vector<32x100xbf16>, vector<32x100xbf16>, vector<32x100xbf16>, vector<32x100xbf16>, vector<32x100xbf16>, vector<32x100xbf16> -> vector<288x100xbf16>
    %cst_18 = arith.constant dense<0.000000e+00> : vector<32x100xf32>
    %32 = tpu.matmul %5, %31, %cst_18 {dimension_numbers = #tpu.dot_dimension_numbers<[1], [0], [0], [1], [0, 0, 1, 1], [], []>} : vector<32x288xbf16>, vector<288x100xbf16>, vector<32x100xf32> -> vector<32x100xf32>
    %c0_19 = arith.constant 0 : index
    %c0_20 = arith.constant 0 : index
    %c0_21 = arith.constant 0 : index
    %33 = vector.load %arg4[%c0_19, %c0_20, %c0_21] : memref<6x32x1xf32, #tpu.memory_space<vmem>>, vector<1x32x1xf32>
    %34 = vector.shape_cast %33 : vector<1x32x1xf32> to vector<32x1xf32>
    %35 = vector.broadcast %34 : vector<32x1xf32> to vector<32x100xf32>
    %36 = arith.addf %32, %35 : vector<32x100xf32>
    %cst_22 = arith.constant 0.000000e+00 : f32
    %37 = vector.broadcast %cst_22 : f32 to vector<32x100xf32>
    %38 = arith.cmpf ogt, %36, %37 : vector<32x100xf32>
    %cst_23 = arith.constant 2.000000e-01 : f32
    %39 = vector.broadcast %cst_23 : f32 to vector<32x100xf32>
    %40 = arith.mulf %39, %36 : vector<32x100xf32>
    %41 = arith.select %38, %36, %40 : vector<32x100xi1>, vector<32x100xf32>
    %c0_24 = arith.constant 0 : index
    %c0_25 = arith.constant 0 : index
    %42 = vector.load %arg8[%c0_24, %c0_25] : memref<32x100xbf16, #tpu.memory_space<vmem>>, vector<32x100xbf16>
    %43 = arith.extf %42 : vector<32x100xbf16> to vector<32x100xf32>
    %44 = vector.broadcast %3 : vector<1x100xf32> to vector<32x100xf32>
    %45 = arith.mulf %44, %41 : vector<32x100xf32>
    %46 = arith.addf %43, %45 : vector<32x100xf32>
    %47 = arith.truncf %46 : vector<32x100xf32> to vector<32x100xbf16>
    %c0_26 = arith.constant 0 : index
    %c0_27 = arith.constant 0 : index
    %48 = vector.load %arg8[%c0_26, %c0_27] : memref<32x100xbf16, #tpu.memory_space<vmem>>, vector<32x100xbf16>
    tpu.vector_store %arg8[%c0_26, %c0_27], %47 {strides = array<i32>} : memref<32x100xbf16, #tpu.memory_space<vmem>>, vector<32x100xbf16>,
    %c1 = arith.constant 1 : index
    %c0_28 = arith.constant 0 : index
    %c0_29 = arith.constant 0 : index
    %49 = vector.load %arg3[%c1, %c0_28, %c0_29] : memref<6x32x288xbf16, #tpu.memory_space<vmem>>, vector<1x32x288xbf16>
    %50 = vector.shape_cast %49 : vector<1x32x288xbf16> to vector<32x288xbf16>
    %c0_30 = arith.constant 0 : index
    %c0_31 = arith.constant 0 : index
    %51 = vector.load %arg8[%c0_30, %c0_31] : memref<32x100xbf16, #tpu.memory_space<vmem>>, vector<32x100xbf16>
    %cst_32 = arith.constant 0.000000e+00 : bf16
    %52 = vector.broadcast %cst_32 : bf16 to vector<32x11xbf16>
    %53 = vector.extract_strided_slice %51 {offsets = [0, 0], sizes = [32, 89], strides = [1, 1]} : vector<32x100xbf16> to vector<32x89xbf16>
    %54 = tpu.concatenate %52, %53 in 1 : vector<32x11xbf16>, vector<32x89xbf16> -> vector<32x100xbf16>
    %cst_33 = arith.constant 0.000000e+00 : bf16
    %55 = vector.broadcast %cst_33 : bf16 to vector<32x10xbf16>
    %56 = vector.extract_strided_slice %51 {offsets = [0, 0], sizes = [32, 90], strides = [1, 1]} : vector<32x100xbf16> to vector<32x90xbf16>
    %57 = tpu.concatenate %55, %56 in 1 : vector<32x10xbf16>, vector<32x90xbf16> -> vector<32x100xbf16>
    %cst_34 = arith.constant 0.000000e+00 : bf16
    %58 = vector.broadcast %cst_34 : bf16 to vector<32x9xbf16>
    %59 = vector.extract_strided_slice %51 {offsets = [0, 0], sizes = [32, 91], strides = [1, 1]} : vector<32x100xbf16> to vector<32x91xbf16>
    %60 = tpu.concatenate %58, %59 in 1 : vector<32x9xbf16>, vector<32x91xbf16> -> vector<32x100xbf16>
    %cst_35 = arith.constant 0.000000e+00 : bf16
    %61 = vector.broadcast %cst_35 : bf16 to vector<32x1xbf16>
    %62 = vector.extract_strided_slice %51 {offsets = [0, 0], sizes = [32, 99], strides = [1, 1]} : vector<32x100xbf16> to vector<32x99xbf16>
    %63 = tpu.concatenate %61, %62 in 1 : vector<32x1xbf16>, vector<32x99xbf16> -> vector<32x100xbf16>
    %cst_36 = arith.constant 0.000000e+00 : bf16
    %64 = vector.broadcast %cst_36 : bf16 to vector<32x1xbf16>
    %65 = vector.extract_strided_slice %51 {offsets = [0, 1], sizes = [32, 99], strides = [1, 1]} : vector<32x100xbf16> to vector<32x99xbf16>
    %66 = tpu.concatenate %65, %64 in 1 : vector<32x99xbf16>, vector<32x1xbf16> -> vector<32x100xbf16>
    %cst_37 = arith.constant 0.000000e+00 : bf16
    %67 = vector.broadcast %cst_37 : bf16 to vector<32x9xbf16>
    %68 = vector.extract_strided_slice %51 {offsets = [0, 9], sizes = [32, 91], strides = [1, 1]} : vector<32x100xbf16> to vector<32x91xbf16>
    %69 = tpu.concatenate %68, %67 in 1 : vector<32x91xbf16>, vector<32x9xbf16> -> vector<32x100xbf16>
    %cst_38 = arith.constant 0.000000e+00 : bf16
    %70 = vector.broadcast %cst_38 : bf16 to vector<32x10xbf16>
    %71 = vector.extract_strided_slice %51 {offsets = [0, 10], sizes = [32, 90], strides = [1, 1]} : vector<32x100xbf16> to vector<32x90xbf16>
    %72 = tpu.concatenate %71, %70 in 1 : vector<32x90xbf16>, vector<32x10xbf16> -> vector<32x100xbf16>
    %cst_39 = arith.constant 0.000000e+00 : bf16
    %73 = vector.broadcast %cst_39 : bf16 to vector<32x11xbf16>
    %74 = vector.extract_strided_slice %51 {offsets = [0, 11], sizes = [32, 89], strides = [1, 1]} : vector<32x100xbf16> to vector<32x89xbf16>
    %75 = tpu.concatenate %74, %73 in 1 : vector<32x89xbf16>, vector<32x11xbf16> -> vector<32x100xbf16>
    %76 = tpu.concatenate %54, %57, %60, %63, %51, %66, %69, %72, %75 in 0 : vector<32x100xbf16>, vector<32x100xbf16>, vector<32x100xbf16>, vector<32x100xbf16>, vector<32x100xbf16>, vector<32x100xbf16>, vector<32x100xbf16>, vector<32x100xbf16>, vector<32x100xbf16> -> vector<288x100xbf16>
    %cst_40 = arith.constant dense<0.000000e+00> : vector<32x100xf32>
    %77 = tpu.matmul %50, %76, %cst_40 {dimension_numbers = #tpu.dot_dimension_numbers<[1], [0], [0], [1], [0, 0, 1, 1], [], []>} : vector<32x288xbf16>, vector<288x100xbf16>, vector<32x100xf32> -> vector<32x100xf32>
    %c1_41 = arith.constant 1 : index
    %c0_42 = arith.constant 0 : index
    %c0_43 = arith.constant 0 : index
    %78 = vector.load %arg4[%c1_41, %c0_42, %c0_43] : memref<6x32x1xf32, #tpu.memory_space<vmem>>, vector<1x32x1xf32>
    %79 = vector.shape_cast %78 : vector<1x32x1xf32> to vector<32x1xf32>
    %80 = vector.broadcast %79 : vector<32x1xf32> to vector<32x100xf32>
    %81 = arith.addf %77, %80 : vector<32x100xf32>
    %cst_44 = arith.constant 0.000000e+00 : f32
    %82 = vector.broadcast %cst_44 : f32 to vector<32x100xf32>
    %83 = arith.cmpf ogt, %81, %82 : vector<32x100xf32>
    %cst_45 = arith.constant 2.000000e-01 : f32
    %84 = vector.broadcast %cst_45 : f32 to vector<32x100xf32>
    %85 = arith.mulf %84, %81 : vector<32x100xf32>
    %86 = arith.select %83, %81, %85 : vector<32x100xi1>, vector<32x100xf32>
    %c0_46 = arith.constant 0 : index
    %c0_47 = arith.constant 0 : index
    %87 = vector.load %arg8[%c0_46, %c0_47] : memref<32x100xbf16, #tpu.memory_space<vmem>>, vector<32x100xbf16>
    %88 = arith.extf %87 : vector<32x100xbf16> to vector<32x100xf32>
    %89 = vector.broadcast %3 : vector<1x100xf32> to vector<32x100xf32>
    %90 = arith.mulf %89, %86 : vector<32x100xf32>
    %91 = arith.addf %88, %90 : vector<32x100xf32>
    %92 = arith.truncf %91 : vector<32x100xf32> to vector<32x100xbf16>
    %c0_48 = arith.constant 0 : index
    %c0_49 = arith.constant 0 : index
    %93 = vector.load %arg8[%c0_48, %c0_49] : memref<32x100xbf16, #tpu.memory_space<vmem>>, vector<32x100xbf16>
    tpu.vector_store %arg8[%c0_48, %c0_49], %92 {strides = array<i32>} : memref<32x100xbf16, #tpu.memory_space<vmem>>, vector<32x100xbf16>,
    %c2 = arith.constant 2 : index
    %c0_50 = arith.constant 0 : index
    %c0_51 = arith.constant 0 : index
    %94 = vector.load %arg3[%c2, %c0_50, %c0_51] : memref<6x32x288xbf16, #tpu.memory_space<vmem>>, vector<1x32x288xbf16>
    %95 = vector.shape_cast %94 : vector<1x32x288xbf16> to vector<32x288xbf16>
    %c0_52 = arith.constant 0 : index
    %c0_53 = arith.constant 0 : index
    %96 = vector.load %arg8[%c0_52, %c0_53] : memref<32x100xbf16, #tpu.memory_space<vmem>>, vector<32x100xbf16>
    %cst_54 = arith.constant 0.000000e+00 : bf16
    %97 = vector.broadcast %cst_54 : bf16 to vector<32x11xbf16>
    %98 = vector.extract_strided_slice %96 {offsets = [0, 0], sizes = [32, 89], strides = [1, 1]} : vector<32x100xbf16> to vector<32x89xbf16>
    %99 = tpu.concatenate %97, %98 in 1 : vector<32x11xbf16>, vector<32x89xbf16> -> vector<32x100xbf16>
    %cst_55 = arith.constant 0.000000e+00 : bf16
    %100 = vector.broadcast %cst_55 : bf16 to vector<32x10xbf16>
    %101 = vector.extract_strided_slice %96 {offsets = [0, 0], sizes = [32, 90], strides = [1, 1]} : vector<32x100xbf16> to vector<32x90xbf16>
    %102 = tpu.concatenate %100, %101 in 1 : vector<32x10xbf16>, vector<32x90xbf16> -> vector<32x100xbf16>
    %cst_56 = arith.constant 0.000000e+00 : bf16
    %103 = vector.broadcast %cst_56 : bf16 to vector<32x9xbf16>
    %104 = vector.extract_strided_slice %96 {offsets = [0, 0], sizes = [32, 91], strides = [1, 1]} : vector<32x100xbf16> to vector<32x91xbf16>
    %105 = tpu.concatenate %103, %104 in 1 : vector<32x9xbf16>, vector<32x91xbf16> -> vector<32x100xbf16>
    %cst_57 = arith.constant 0.000000e+00 : bf16
    %106 = vector.broadcast %cst_57 : bf16 to vector<32x1xbf16>
    %107 = vector.extract_strided_slice %96 {offsets = [0, 0], sizes = [32, 99], strides = [1, 1]} : vector<32x100xbf16> to vector<32x99xbf16>
    %108 = tpu.concatenate %106, %107 in 1 : vector<32x1xbf16>, vector<32x99xbf16> -> vector<32x100xbf16>
    %cst_58 = arith.constant 0.000000e+00 : bf16
    %109 = vector.broadcast %cst_58 : bf16 to vector<32x1xbf16>
    %110 = vector.extract_strided_slice %96 {offsets = [0, 1], sizes = [32, 99], strides = [1, 1]} : vector<32x100xbf16> to vector<32x99xbf16>
    %111 = tpu.concatenate %110, %109 in 1 : vector<32x99xbf16>, vector<32x1xbf16> -> vector<32x100xbf16>
    %cst_59 = arith.constant 0.000000e+00 : bf16
    %112 = vector.broadcast %cst_59 : bf16 to vector<32x9xbf16>
    %113 = vector.extract_strided_slice %96 {offsets = [0, 9], sizes = [32, 91], strides = [1, 1]} : vector<32x100xbf16> to vector<32x91xbf16>
    %114 = tpu.concatenate %113, %112 in 1 : vector<32x91xbf16>, vector<32x9xbf16> -> vector<32x100xbf16>
    %cst_60 = arith.constant 0.000000e+00 : bf16
    %115 = vector.broadcast %cst_60 : bf16 to vector<32x10xbf16>
    %116 = vector.extract_strided_slice %96 {offsets = [0, 10], sizes = [32, 90], strides = [1, 1]} : vector<32x100xbf16> to vector<32x90xbf16>
    %117 = tpu.concatenate %116, %115 in 1 : vector<32x90xbf16>, vector<32x10xbf16> -> vector<32x100xbf16>
    %cst_61 = arith.constant 0.000000e+00 : bf16
    %118 = vector.broadcast %cst_61 : bf16 to vector<32x11xbf16>
    %119 = vector.extract_strided_slice %96 {offsets = [0, 11], sizes = [32, 89], strides = [1, 1]} : vector<32x100xbf16> to vector<32x89xbf16>
    %120 = tpu.concatenate %119, %118 in 1 : vector<32x89xbf16>, vector<32x11xbf16> -> vector<32x100xbf16>
    %121 = tpu.concatenate %99, %102, %105, %108, %96, %111, %114, %117, %120 in 0 : vector<32x100xbf16>, vector<32x100xbf16>, vector<32x100xbf16>, vector<32x100xbf16>, vector<32x100xbf16>, vector<32x100xbf16>, vector<32x100xbf16>, vector<32x100xbf16>, vector<32x100xbf16> -> vector<288x100xbf16>
    %cst_62 = arith.constant dense<0.000000e+00> : vector<32x100xf32>
    %122 = tpu.matmul %95, %121, %cst_62 {dimension_numbers = #tpu.dot_dimension_numbers<[1], [0], [0], [1], [0, 0, 1, 1], [], []>} : vector<32x288xbf16>, vector<288x100xbf16>, vector<32x100xf32> -> vector<32x100xf32>
    %c2_63 = arith.constant 2 : index
    %c0_64 = arith.constant 0 : index
    %c0_65 = arith.constant 0 : index
    %123 = vector.load %arg4[%c2_63, %c0_64, %c0_65] : memref<6x32x1xf32, #tpu.memory_space<vmem>>, vector<1x32x1xf32>
    %124 = vector.shape_cast %123 : vector<1x32x1xf32> to vector<32x1xf32>
    %125 = vector.broadcast %124 : vector<32x1xf32> to vector<32x100xf32>
    %126 = arith.addf %122, %125 : vector<32x100xf32>
    %cst_66 = arith.constant 0.000000e+00 : f32
    %127 = vector.broadcast %cst_66 : f32 to vector<32x100xf32>
    %128 = arith.cmpf ogt, %126, %127 : vector<32x100xf32>
    %cst_67 = arith.constant 2.000000e-01 : f32
    %129 = vector.broadcast %cst_67 : f32 to vector<32x100xf32>
    %130 = arith.mulf %129, %126 : vector<32x100xf32>
    %131 = arith.select %128, %126, %130 : vector<32x100xi1>, vector<32x100xf32>
    %c0_68 = arith.constant 0 : index
    %c0_69 = arith.constant 0 : index
    %132 = vector.load %arg8[%c0_68, %c0_69] : memref<32x100xbf16, #tpu.memory_space<vmem>>, vector<32x100xbf16>
    %133 = arith.extf %132 : vector<32x100xbf16> to vector<32x100xf32>
    %134 = vector.broadcast %3 : vector<1x100xf32> to vector<32x100xf32>
    %135 = arith.mulf %134, %131 : vector<32x100xf32>
    %136 = arith.addf %133, %135 : vector<32x100xf32>
    %137 = arith.truncf %136 : vector<32x100xf32> to vector<32x100xbf16>
    %c0_70 = arith.constant 0 : index
    %c0_71 = arith.constant 0 : index
    %138 = vector.load %arg8[%c0_70, %c0_71] : memref<32x100xbf16, #tpu.memory_space<vmem>>, vector<32x100xbf16>
    tpu.vector_store %arg8[%c0_70, %c0_71], %137 {strides = array<i32>} : memref<32x100xbf16, #tpu.memory_space<vmem>>, vector<32x100xbf16>,
    %c3 = arith.constant 3 : index
    %c0_72 = arith.constant 0 : index
    %c0_73 = arith.constant 0 : index
    %139 = vector.load %arg3[%c3, %c0_72, %c0_73] : memref<6x32x288xbf16, #tpu.memory_space<vmem>>, vector<1x32x288xbf16>
    %140 = vector.shape_cast %139 : vector<1x32x288xbf16> to vector<32x288xbf16>
    %c0_74 = arith.constant 0 : index
    %c0_75 = arith.constant 0 : index
    %141 = vector.load %arg8[%c0_74, %c0_75] : memref<32x100xbf16, #tpu.memory_space<vmem>>, vector<32x100xbf16>
    %cst_76 = arith.constant 0.000000e+00 : bf16
    %142 = vector.broadcast %cst_76 : bf16 to vector<32x11xbf16>
    %143 = vector.extract_strided_slice %141 {offsets = [0, 0], sizes = [32, 89], strides = [1, 1]} : vector<32x100xbf16> to vector<32x89xbf16>
    %144 = tpu.concatenate %142, %143 in 1 : vector<32x11xbf16>, vector<32x89xbf16> -> vector<32x100xbf16>
    %cst_77 = arith.constant 0.000000e+00 : bf16
    %145 = vector.broadcast %cst_77 : bf16 to vector<32x10xbf16>
    %146 = vector.extract_strided_slice %141 {offsets = [0, 0], sizes = [32, 90], strides = [1, 1]} : vector<32x100xbf16> to vector<32x90xbf16>
    %147 = tpu.concatenate %145, %146 in 1 : vector<32x10xbf16>, vector<32x90xbf16> -> vector<32x100xbf16>
    %cst_78 = arith.constant 0.000000e+00 : bf16
    %148 = vector.broadcast %cst_78 : bf16 to vector<32x9xbf16>
    %149 = vector.extract_strided_slice %141 {offsets = [0, 0], sizes = [32, 91], strides = [1, 1]} : vector<32x100xbf16> to vector<32x91xbf16>
    %150 = tpu.concatenate %148, %149 in 1 : vector<32x9xbf16>, vector<32x91xbf16> -> vector<32x100xbf16>
    %cst_79 = arith.constant 0.000000e+00 : bf16
    %151 = vector.broadcast %cst_79 : bf16 to vector<32x1xbf16>
    %152 = vector.extract_strided_slice %141 {offsets = [0, 0], sizes = [32, 99], strides = [1, 1]} : vector<32x100xbf16> to vector<32x99xbf16>
    %153 = tpu.concatenate %151, %152 in 1 : vector<32x1xbf16>, vector<32x99xbf16> -> vector<32x100xbf16>
    %cst_80 = arith.constant 0.000000e+00 : bf16
    %154 = vector.broadcast %cst_80 : bf16 to vector<32x1xbf16>
    %155 = vector.extract_strided_slice %141 {offsets = [0, 1], sizes = [32, 99], strides = [1, 1]} : vector<32x100xbf16> to vector<32x99xbf16>
    %156 = tpu.concatenate %155, %154 in 1 : vector<32x99xbf16>, vector<32x1xbf16> -> vector<32x100xbf16>
    %cst_81 = arith.constant 0.000000e+00 : bf16
    %157 = vector.broadcast %cst_81 : bf16 to vector<32x9xbf16>
    %158 = vector.extract_strided_slice %141 {offsets = [0, 9], sizes = [32, 91], strides = [1, 1]} : vector<32x100xbf16> to vector<32x91xbf16>
    %159 = tpu.concatenate %158, %157 in 1 : vector<32x91xbf16>, vector<32x9xbf16> -> vector<32x100xbf16>
    %cst_82 = arith.constant 0.000000e+00 : bf16
    %160 = vector.broadcast %cst_82 : bf16 to vector<32x10xbf16>
    %161 = vector.extract_strided_slice %141 {offsets = [0, 10], sizes = [32, 90], strides = [1, 1]} : vector<32x100xbf16> to vector<32x90xbf16>
    %162 = tpu.concatenate %161, %160 in 1 : vector<32x90xbf16>, vector<32x10xbf16> -> vector<32x100xbf16>
    %cst_83 = arith.constant 0.000000e+00 : bf16
    %163 = vector.broadcast %cst_83 : bf16 to vector<32x11xbf16>
    %164 = vector.extract_strided_slice %141 {offsets = [0, 11], sizes = [32, 89], strides = [1, 1]} : vector<32x100xbf16> to vector<32x89xbf16>
    %165 = tpu.concatenate %164, %163 in 1 : vector<32x89xbf16>, vector<32x11xbf16> -> vector<32x100xbf16>
    %166 = tpu.concatenate %144, %147, %150, %153, %141, %156, %159, %162, %165 in 0 : vector<32x100xbf16>, vector<32x100xbf16>, vector<32x100xbf16>, vector<32x100xbf16>, vector<32x100xbf16>, vector<32x100xbf16>, vector<32x100xbf16>, vector<32x100xbf16>, vector<32x100xbf16> -> vector<288x100xbf16>
    %cst_84 = arith.constant dense<0.000000e+00> : vector<32x100xf32>
    %167 = tpu.matmul %140, %166, %cst_84 {dimension_numbers = #tpu.dot_dimension_numbers<[1], [0], [0], [1], [0, 0, 1, 1], [], []>} : vector<32x288xbf16>, vector<288x100xbf16>, vector<32x100xf32> -> vector<32x100xf32>
    %c3_85 = arith.constant 3 : index
    %c0_86 = arith.constant 0 : index
    %c0_87 = arith.constant 0 : index
    %168 = vector.load %arg4[%c3_85, %c0_86, %c0_87] : memref<6x32x1xf32, #tpu.memory_space<vmem>>, vector<1x32x1xf32>
    %169 = vector.shape_cast %168 : vector<1x32x1xf32> to vector<32x1xf32>
    %170 = vector.broadcast %169 : vector<32x1xf32> to vector<32x100xf32>
    %171 = arith.addf %167, %170 : vector<32x100xf32>
    %cst_88 = arith.constant 0.000000e+00 : f32
    %172 = vector.broadcast %cst_88 : f32 to vector<32x100xf32>
    %173 = arith.cmpf ogt, %171, %172 : vector<32x100xf32>
    %cst_89 = arith.constant 2.000000e-01 : f32
    %174 = vector.broadcast %cst_89 : f32 to vector<32x100xf32>
    %175 = arith.mulf %174, %171 : vector<32x100xf32>
    %176 = arith.select %173, %171, %175 : vector<32x100xi1>, vector<32x100xf32>
    %c0_90 = arith.constant 0 : index
    %c0_91 = arith.constant 0 : index
    %177 = vector.load %arg8[%c0_90, %c0_91] : memref<32x100xbf16, #tpu.memory_space<vmem>>, vector<32x100xbf16>
    %178 = arith.extf %177 : vector<32x100xbf16> to vector<32x100xf32>
    %179 = vector.broadcast %3 : vector<1x100xf32> to vector<32x100xf32>
    %180 = arith.mulf %179, %176 : vector<32x100xf32>
    %181 = arith.addf %178, %180 : vector<32x100xf32>
    %182 = arith.truncf %181 : vector<32x100xf32> to vector<32x100xbf16>
    %c0_92 = arith.constant 0 : index
    %c0_93 = arith.constant 0 : index
    %183 = vector.load %arg8[%c0_92, %c0_93] : memref<32x100xbf16, #tpu.memory_space<vmem>>, vector<32x100xbf16>
    tpu.vector_store %arg8[%c0_92, %c0_93], %182 {strides = array<i32>} : memref<32x100xbf16, #tpu.memory_space<vmem>>, vector<32x100xbf16>,
    %c4 = arith.constant 4 : index
    %c0_94 = arith.constant 0 : index
    %c0_95 = arith.constant 0 : index
    %184 = vector.load %arg3[%c4, %c0_94, %c0_95] : memref<6x32x288xbf16, #tpu.memory_space<vmem>>, vector<1x32x288xbf16>
    %185 = vector.shape_cast %184 : vector<1x32x288xbf16> to vector<32x288xbf16>
    %c0_96 = arith.constant 0 : index
    %c0_97 = arith.constant 0 : index
    %186 = vector.load %arg8[%c0_96, %c0_97] : memref<32x100xbf16, #tpu.memory_space<vmem>>, vector<32x100xbf16>
    %cst_98 = arith.constant 0.000000e+00 : bf16
    %187 = vector.broadcast %cst_98 : bf16 to vector<32x11xbf16>
    %188 = vector.extract_strided_slice %186 {offsets = [0, 0], sizes = [32, 89], strides = [1, 1]} : vector<32x100xbf16> to vector<32x89xbf16>
    %189 = tpu.concatenate %187, %188 in 1 : vector<32x11xbf16>, vector<32x89xbf16> -> vector<32x100xbf16>
    %cst_99 = arith.constant 0.000000e+00 : bf16
    %190 = vector.broadcast %cst_99 : bf16 to vector<32x10xbf16>
    %191 = vector.extract_strided_slice %186 {offsets = [0, 0], sizes = [32, 90], strides = [1, 1]} : vector<32x100xbf16> to vector<32x90xbf16>
    %192 = tpu.concatenate %190, %191 in 1 : vector<32x10xbf16>, vector<32x90xbf16> -> vector<32x100xbf16>
    %cst_100 = arith.constant 0.000000e+00 : bf16
    %193 = vector.broadcast %cst_100 : bf16 to vector<32x9xbf16>
    %194 = vector.extract_strided_slice %186 {offsets = [0, 0], sizes = [32, 91], strides = [1, 1]} : vector<32x100xbf16> to vector<32x91xbf16>
    %195 = tpu.concatenate %193, %194 in 1 : vector<32x9xbf16>, vector<32x91xbf16> -> vector<32x100xbf16>
    %cst_101 = arith.constant 0.000000e+00 : bf16
    %196 = vector.broadcast %cst_101 : bf16 to vector<32x1xbf16>
    %197 = vector.extract_strided_slice %186 {offsets = [0, 0], sizes = [32, 99], strides = [1, 1]} : vector<32x100xbf16> to vector<32x99xbf16>
    %198 = tpu.concatenate %196, %197 in 1 : vector<32x1xbf16>, vector<32x99xbf16> -> vector<32x100xbf16>
    %cst_102 = arith.constant 0.000000e+00 : bf16
    %199 = vector.broadcast %cst_102 : bf16 to vector<32x1xbf16>
    %200 = vector.extract_strided_slice %186 {offsets = [0, 1], sizes = [32, 99], strides = [1, 1]} : vector<32x100xbf16> to vector<32x99xbf16>
    %201 = tpu.concatenate %200, %199 in 1 : vector<32x99xbf16>, vector<32x1xbf16> -> vector<32x100xbf16>
    %cst_103 = arith.constant 0.000000e+00 : bf16
    %202 = vector.broadcast %cst_103 : bf16 to vector<32x9xbf16>
    %203 = vector.extract_strided_slice %186 {offsets = [0, 9], sizes = [32, 91], strides = [1, 1]} : vector<32x100xbf16> to vector<32x91xbf16>
    %204 = tpu.concatenate %203, %202 in 1 : vector<32x91xbf16>, vector<32x9xbf16> -> vector<32x100xbf16>
    %cst_104 = arith.constant 0.000000e+00 : bf16
    %205 = vector.broadcast %cst_104 : bf16 to vector<32x10xbf16>
    %206 = vector.extract_strided_slice %186 {offsets = [0, 10], sizes = [32, 90], strides = [1, 1]} : vector<32x100xbf16> to vector<32x90xbf16>
    %207 = tpu.concatenate %206, %205 in 1 : vector<32x90xbf16>, vector<32x10xbf16> -> vector<32x100xbf16>
    %cst_105 = arith.constant 0.000000e+00 : bf16
    %208 = vector.broadcast %cst_105 : bf16 to vector<32x11xbf16>
    %209 = vector.extract_strided_slice %186 {offsets = [0, 11], sizes = [32, 89], strides = [1, 1]} : vector<32x100xbf16> to vector<32x89xbf16>
    %210 = tpu.concatenate %209, %208 in 1 : vector<32x89xbf16>, vector<32x11xbf16> -> vector<32x100xbf16>
    %211 = tpu.concatenate %189, %192, %195, %198, %186, %201, %204, %207, %210 in 0 : vector<32x100xbf16>, vector<32x100xbf16>, vector<32x100xbf16>, vector<32x100xbf16>, vector<32x100xbf16>, vector<32x100xbf16>, vector<32x100xbf16>, vector<32x100xbf16>, vector<32x100xbf16> -> vector<288x100xbf16>
    %cst_106 = arith.constant dense<0.000000e+00> : vector<32x100xf32>
    %212 = tpu.matmul %185, %211, %cst_106 {dimension_numbers = #tpu.dot_dimension_numbers<[1], [0], [0], [1], [0, 0, 1, 1], [], []>} : vector<32x288xbf16>, vector<288x100xbf16>, vector<32x100xf32> -> vector<32x100xf32>
    %c4_107 = arith.constant 4 : index
    %c0_108 = arith.constant 0 : index
    %c0_109 = arith.constant 0 : index
    %213 = vector.load %arg4[%c4_107, %c0_108, %c0_109] : memref<6x32x1xf32, #tpu.memory_space<vmem>>, vector<1x32x1xf32>
    %214 = vector.shape_cast %213 : vector<1x32x1xf32> to vector<32x1xf32>
    %215 = vector.broadcast %214 : vector<32x1xf32> to vector<32x100xf32>
    %216 = arith.addf %212, %215 : vector<32x100xf32>
    %cst_110 = arith.constant 0.000000e+00 : f32
    %217 = vector.broadcast %cst_110 : f32 to vector<32x100xf32>
    %218 = arith.cmpf ogt, %216, %217 : vector<32x100xf32>
    %cst_111 = arith.constant 2.000000e-01 : f32
    %219 = vector.broadcast %cst_111 : f32 to vector<32x100xf32>
    %220 = arith.mulf %219, %216 : vector<32x100xf32>
    %221 = arith.select %218, %216, %220 : vector<32x100xi1>, vector<32x100xf32>
    %c0_112 = arith.constant 0 : index
    %c0_113 = arith.constant 0 : index
    %222 = vector.load %arg8[%c0_112, %c0_113] : memref<32x100xbf16, #tpu.memory_space<vmem>>, vector<32x100xbf16>
    %223 = arith.extf %222 : vector<32x100xbf16> to vector<32x100xf32>
    %224 = vector.broadcast %3 : vector<1x100xf32> to vector<32x100xf32>
    %225 = arith.mulf %224, %221 : vector<32x100xf32>
    %226 = arith.addf %223, %225 : vector<32x100xf32>
    %227 = arith.truncf %226 : vector<32x100xf32> to vector<32x100xbf16>
    %c0_114 = arith.constant 0 : index
    %c0_115 = arith.constant 0 : index
    %228 = vector.load %arg8[%c0_114, %c0_115] : memref<32x100xbf16, #tpu.memory_space<vmem>>, vector<32x100xbf16>
    tpu.vector_store %arg8[%c0_114, %c0_115], %227 {strides = array<i32>} : memref<32x100xbf16, #tpu.memory_space<vmem>>, vector<32x100xbf16>,
    %c5 = arith.constant 5 : index
    %c0_116 = arith.constant 0 : index
    %c0_117 = arith.constant 0 : index
    %229 = vector.load %arg3[%c5, %c0_116, %c0_117] : memref<6x32x288xbf16, #tpu.memory_space<vmem>>, vector<1x32x288xbf16>
    %230 = vector.shape_cast %229 : vector<1x32x288xbf16> to vector<32x288xbf16>
    %c0_118 = arith.constant 0 : index
    %c0_119 = arith.constant 0 : index
    %231 = vector.load %arg8[%c0_118, %c0_119] : memref<32x100xbf16, #tpu.memory_space<vmem>>, vector<32x100xbf16>
    %cst_120 = arith.constant 0.000000e+00 : bf16
    %232 = vector.broadcast %cst_120 : bf16 to vector<32x11xbf16>
    %233 = vector.extract_strided_slice %231 {offsets = [0, 0], sizes = [32, 89], strides = [1, 1]} : vector<32x100xbf16> to vector<32x89xbf16>
    %234 = tpu.concatenate %232, %233 in 1 : vector<32x11xbf16>, vector<32x89xbf16> -> vector<32x100xbf16>
    %cst_121 = arith.constant 0.000000e+00 : bf16
    %235 = vector.broadcast %cst_121 : bf16 to vector<32x10xbf16>
    %236 = vector.extract_strided_slice %231 {offsets = [0, 0], sizes = [32, 90], strides = [1, 1]} : vector<32x100xbf16> to vector<32x90xbf16>
    %237 = tpu.concatenate %235, %236 in 1 : vector<32x10xbf16>, vector<32x90xbf16> -> vector<32x100xbf16>
    %cst_122 = arith.constant 0.000000e+00 : bf16
    %238 = vector.broadcast %cst_122 : bf16 to vector<32x9xbf16>
    %239 = vector.extract_strided_slice %231 {offsets = [0, 0], sizes = [32, 91], strides = [1, 1]} : vector<32x100xbf16> to vector<32x91xbf16>
    %240 = tpu.concatenate %238, %239 in 1 : vector<32x9xbf16>, vector<32x91xbf16> -> vector<32x100xbf16>
    %cst_123 = arith.constant 0.000000e+00 : bf16
    %241 = vector.broadcast %cst_123 : bf16 to vector<32x1xbf16>
    %242 = vector.extract_strided_slice %231 {offsets = [0, 0], sizes = [32, 99], strides = [1, 1]} : vector<32x100xbf16> to vector<32x99xbf16>
    %243 = tpu.concatenate %241, %242 in 1 : vector<32x1xbf16>, vector<32x99xbf16> -> vector<32x100xbf16>
    %cst_124 = arith.constant 0.000000e+00 : bf16
    %244 = vector.broadcast %cst_124 : bf16 to vector<32x1xbf16>
    %245 = vector.extract_strided_slice %231 {offsets = [0, 1], sizes = [32, 99], strides = [1, 1]} : vector<32x100xbf16> to vector<32x99xbf16>
    %246 = tpu.concatenate %245, %244 in 1 : vector<32x99xbf16>, vector<32x1xbf16> -> vector<32x100xbf16>
    %cst_125 = arith.constant 0.000000e+00 : bf16
    %247 = vector.broadcast %cst_125 : bf16 to vector<32x9xbf16>
    %248 = vector.extract_strided_slice %231 {offsets = [0, 9], sizes = [32, 91], strides = [1, 1]} : vector<32x100xbf16> to vector<32x91xbf16>
    %249 = tpu.concatenate %248, %247 in 1 : vector<32x91xbf16>, vector<32x9xbf16> -> vector<32x100xbf16>
    %cst_126 = arith.constant 0.000000e+00 : bf16
    %250 = vector.broadcast %cst_126 : bf16 to vector<32x10xbf16>
    %251 = vector.extract_strided_slice %231 {offsets = [0, 10], sizes = [32, 90], strides = [1, 1]} : vector<32x100xbf16> to vector<32x90xbf16>
    %252 = tpu.concatenate %251, %250 in 1 : vector<32x90xbf16>, vector<32x10xbf16> -> vector<32x100xbf16>
    %cst_127 = arith.constant 0.000000e+00 : bf16
    %253 = vector.broadcast %cst_127 : bf16 to vector<32x11xbf16>
    %254 = vector.extract_strided_slice %231 {offsets = [0, 11], sizes = [32, 89], strides = [1, 1]} : vector<32x100xbf16> to vector<32x89xbf16>
    %255 = tpu.concatenate %254, %253 in 1 : vector<32x89xbf16>, vector<32x11xbf16> -> vector<32x100xbf16>
    %256 = tpu.concatenate %234, %237, %240, %243, %231, %246, %249, %252, %255 in 0 : vector<32x100xbf16>, vector<32x100xbf16>, vector<32x100xbf16>, vector<32x100xbf16>, vector<32x100xbf16>, vector<32x100xbf16>, vector<32x100xbf16>, vector<32x100xbf16>, vector<32x100xbf16> -> vector<288x100xbf16>
    %cst_128 = arith.constant dense<0.000000e+00> : vector<32x100xf32>
    %257 = tpu.matmul %230, %256, %cst_128 {dimension_numbers = #tpu.dot_dimension_numbers<[1], [0], [0], [1], [0, 0, 1, 1], [], []>} : vector<32x288xbf16>, vector<288x100xbf16>, vector<32x100xf32> -> vector<32x100xf32>
    %c5_129 = arith.constant 5 : index
    %c0_130 = arith.constant 0 : index
    %c0_131 = arith.constant 0 : index
    %258 = vector.load %arg4[%c5_129, %c0_130, %c0_131] : memref<6x32x1xf32, #tpu.memory_space<vmem>>, vector<1x32x1xf32>
    %259 = vector.shape_cast %258 : vector<1x32x1xf32> to vector<32x1xf32>
    %260 = vector.broadcast %259 : vector<32x1xf32> to vector<32x100xf32>
    %261 = arith.addf %257, %260 : vector<32x100xf32>
    %cst_132 = arith.constant 0.000000e+00 : f32
    %262 = vector.broadcast %cst_132 : f32 to vector<32x100xf32>
    %263 = arith.cmpf ogt, %261, %262 : vector<32x100xf32>
    %cst_133 = arith.constant 2.000000e-01 : f32
    %264 = vector.broadcast %cst_133 : f32 to vector<32x100xf32>
    %265 = arith.mulf %264, %261 : vector<32x100xf32>
    %266 = arith.select %263, %261, %265 : vector<32x100xi1>, vector<32x100xf32>
    %c0_134 = arith.constant 0 : index
    %c0_135 = arith.constant 0 : index
    %267 = vector.load %arg8[%c0_134, %c0_135] : memref<32x100xbf16, #tpu.memory_space<vmem>>, vector<32x100xbf16>
    %268 = arith.extf %267 : vector<32x100xbf16> to vector<32x100xf32>
    %269 = vector.broadcast %3 : vector<1x100xf32> to vector<32x100xf32>
    %270 = arith.mulf %269, %266 : vector<32x100xf32>
    %271 = arith.addf %268, %270 : vector<32x100xf32>
    %272 = arith.truncf %271 : vector<32x100xf32> to vector<32x100xbf16>
    %c0_136 = arith.constant 0 : index
    %c0_137 = arith.constant 0 : index
    %273 = vector.load %arg8[%c0_136, %c0_137] : memref<32x100xbf16, #tpu.memory_space<vmem>>, vector<32x100xbf16>
    tpu.vector_store %arg8[%c0_136, %c0_137], %272 {strides = array<i32>} : memref<32x100xbf16, #tpu.memory_space<vmem>>, vector<32x100xbf16>,
    %c0_138 = arith.constant 0 : index
    %c0_139 = arith.constant 0 : index
    %274 = vector.load %arg5[%c0_138, %c0_139] : memref<32x288xbf16, #tpu.memory_space<vmem>>, vector<32x288xbf16>
    %c0_140 = arith.constant 0 : index
    %c0_141 = arith.constant 0 : index
    %275 = vector.load %arg8[%c0_140, %c0_141] : memref<32x100xbf16, #tpu.memory_space<vmem>>, vector<32x100xbf16>
    %cst_142 = arith.constant 0.000000e+00 : bf16
    %276 = vector.broadcast %cst_142 : bf16 to vector<32x11xbf16>
    %277 = vector.extract_strided_slice %275 {offsets = [0, 0], sizes = [32, 89], strides = [1, 1]} : vector<32x100xbf16> to vector<32x89xbf16>
    %278 = tpu.concatenate %276, %277 in 1 : vector<32x11xbf16>, vector<32x89xbf16> -> vector<32x100xbf16>
    %cst_143 = arith.constant 0.000000e+00 : bf16
    %279 = vector.broadcast %cst_143 : bf16 to vector<32x10xbf16>
    %280 = vector.extract_strided_slice %275 {offsets = [0, 0], sizes = [32, 90], strides = [1, 1]} : vector<32x100xbf16> to vector<32x90xbf16>
    %281 = tpu.concatenate %279, %280 in 1 : vector<32x10xbf16>, vector<32x90xbf16> -> vector<32x100xbf16>
    %cst_144 = arith.constant 0.000000e+00 : bf16
    %282 = vector.broadcast %cst_144 : bf16 to vector<32x9xbf16>
    %283 = vector.extract_strided_slice %275 {offsets = [0, 0], sizes = [32, 91], strides = [1, 1]} : vector<32x100xbf16> to vector<32x91xbf16>
    %284 = tpu.concatenate %282, %283 in 1 : vector<32x9xbf16>, vector<32x91xbf16> -> vector<32x100xbf16>
    %cst_145 = arith.constant 0.000000e+00 : bf16
    %285 = vector.broadcast %cst_145 : bf16 to vector<32x1xbf16>
    %286 = vector.extract_strided_slice %275 {offsets = [0, 0], sizes = [32, 99], strides = [1, 1]} : vector<32x100xbf16> to vector<32x99xbf16>
    %287 = tpu.concatenate %285, %286 in 1 : vector<32x1xbf16>, vector<32x99xbf16> -> vector<32x100xbf16>
    %cst_146 = arith.constant 0.000000e+00 : bf16
    %288 = vector.broadcast %cst_146 : bf16 to vector<32x1xbf16>
    %289 = vector.extract_strided_slice %275 {offsets = [0, 1], sizes = [32, 99], strides = [1, 1]} : vector<32x100xbf16> to vector<32x99xbf16>
    %290 = tpu.concatenate %289, %288 in 1 : vector<32x99xbf16>, vector<32x1xbf16> -> vector<32x100xbf16>
    %cst_147 = arith.constant 0.000000e+00 : bf16
    %291 = vector.broadcast %cst_147 : bf16 to vector<32x9xbf16>
    %292 = vector.extract_strided_slice %275 {offsets = [0, 9], sizes = [32, 91], strides = [1, 1]} : vector<32x100xbf16> to vector<32x91xbf16>
    %293 = tpu.concatenate %292, %291 in 1 : vector<32x91xbf16>, vector<32x9xbf16> -> vector<32x100xbf16>
    %cst_148 = arith.constant 0.000000e+00 : bf16
    %294 = vector.broadcast %cst_148 : bf16 to vector<32x10xbf16>
    %295 = vector.extract_strided_slice %275 {offsets = [0, 10], sizes = [32, 90], strides = [1, 1]} : vector<32x100xbf16> to vector<32x90xbf16>
    %296 = tpu.concatenate %295, %294 in 1 : vector<32x90xbf16>, vector<32x10xbf16> -> vector<32x100xbf16>
    %cst_149 = arith.constant 0.000000e+00 : bf16
    %297 = vector.broadcast %cst_149 : bf16 to vector<32x11xbf16>
    %298 = vector.extract_strided_slice %275 {offsets = [0, 11], sizes = [32, 89], strides = [1, 1]} : vector<32x100xbf16> to vector<32x89xbf16>
    %299 = tpu.concatenate %298, %297 in 1 : vector<32x89xbf16>, vector<32x11xbf16> -> vector<32x100xbf16>
    %300 = tpu.concatenate %278, %281, %284, %287, %275, %290, %293, %296, %299 in 0 : vector<32x100xbf16>, vector<32x100xbf16>, vector<32x100xbf16>, vector<32x100xbf16>, vector<32x100xbf16>, vector<32x100xbf16>, vector<32x100xbf16>, vector<32x100xbf16>, vector<32x100xbf16> -> vector<288x100xbf16>
    %cst_150 = arith.constant dense<0.000000e+00> : vector<32x100xf32>
    %301 = tpu.matmul %274, %300, %cst_150 {dimension_numbers = #tpu.dot_dimension_numbers<[1], [0], [0], [1], [0, 0, 1, 1], [], []>} : vector<32x288xbf16>, vector<288x100xbf16>, vector<32x100xf32> -> vector<32x100xf32>
    %c0_151 = arith.constant 0 : index
    %c0_152 = arith.constant 0 : index
    %302 = vector.load %arg6[%c0_151, %c0_152] : memref<32x1xf32, #tpu.memory_space<vmem>>, vector<32x1xf32>
    %303 = vector.broadcast %302 : vector<32x1xf32> to vector<32x100xf32>
    %304 = arith.addf %301, %303 : vector<32x100xf32>
    %c0_153 = arith.constant 0 : index
    %c0_154 = arith.constant 0 : index
    %c0_155 = arith.constant 0 : index
    %305 = vector.load %arg7[%c0_153, %c0_154, %c0_155] : memref<1x32x100xf32, #tpu.memory_space<vmem>>, vector<1x32x100xf32>
    %306 = vector.shape_cast %305 : vector<1x32x100xf32> to vector<32x100xf32>
    %307 = vector.shape_cast %304 : vector<32x100xf32> to vector<1x32x100xf32>
    tpu.vector_store %arg7[%c0_153, %c0_154, %c0_155], %307 {strides = array<i32>} : memref<1x32x100xf32, #tpu.memory_space<vmem>>, vector<1x32x100xf32>,
    return
  }
  func.func @transform_0(%arg0: i32) -> (i32, i32, i32) {
    %c0_i32 = arith.constant 0 : i32
    %c0_i32_0 = arith.constant 0 : i32
    %c0_i32_1 = arith.constant 0 : i32
    return %arg0, %c0_i32, %c0_i32_0 : i32, i32, i32
  }
  func.func @transform_1(%arg0: i32) -> (i32, i32) {
    %c0_i32 = arith.constant 0 : i32
    %c0_i32_0 = arith.constant 0 : i32
    %c0_i32_1 = arith.constant 0 : i32
    return %c0_i32, %c0_i32_0 : i32, i32
  }
  func.func @transform_2(%arg0: i32) -> (i32, i32, i32) {
    %c0_i32 = arith.constant 0 : i32
    %c0_i32_0 = arith.constant 0 : i32
    %c0_i32_1 = arith.constant 0 : i32
    %c0_i32_2 = arith.constant 0 : i32
    return %c0_i32, %c0_i32_0, %c0_i32_1 : i32, i32, i32
  }
  func.func @transform_3(%arg0: i32) -> (i32, i32, i32) {
    %c0_i32 = arith.constant 0 : i32
    %c0_i32_0 = arith.constant 0 : i32
    %c0_i32_1 = arith.constant 0 : i32
    %c0_i32_2 = arith.constant 0 : i32
    return %c0_i32, %c0_i32_0, %c0_i32_1 : i32, i32, i32
  }
  func.func @transform_4(%arg0: i32) -> (i32, i32) {
    %c0_i32 = arith.constant 0 : i32
    %c0_i32_0 = arith.constant 0 : i32
    %c0_i32_1 = arith.constant 0 : i32
    return %c0_i32, %c0_i32_0 : i32, i32
  }
  func.func @transform_5(%arg0: i32) -> (i32, i32) {
    %c0_i32 = arith.constant 0 : i32
    %c0_i32_0 = arith.constant 0 : i32
    %c0_i32_1 = arith.constant 0 : i32
    return %c0_i32, %c0_i32_0 : i32, i32
  }
  func.func @transform_6(%arg0: i32) -> (i32, i32, i32) {
    %c0_i32 = arith.constant 0 : i32
    %c0_i32_0 = arith.constant 0 : i32
    %c0_i32_1 = arith.constant 0 : i32
    return %arg0, %c0_i32, %c0_i32_0 : i32, i32, i32
  }
}

</mosaic_0001>

<bundles_post_ra>
// kernel: feature_extractor_forward.1
= control target key start
LH: loop header
LB: loop body
LE: loop exit
PB: predicated region body
PF: predicated region fallthrough
CT: control target
= control target key end

     0   :  { %s2638_s21 = smov 0   ;;  %s3492_s0 = inlined_call_operand.vmem [shape: bf16[2,32,100], index: 0, kind: input, shape index: {}]   ;;  %s3493_s1 = inlined_call_operand.vmem [shape: f32[1,100], index: 1, kind: input, shape index: {}]   ;;  %s3494_s2 = inlined_call_operand.vmem [shape: bf16[6,32,288], index: 2, kind: input, shape index: {}]   ;;  %s3495_s3 = inlined_call_operand.vmem [shape: f32[6,32,1], index: 3, kind: input, shape index: {}]   ;;  %s3496_s4 = inlined_call_operand.vmem [shape: bf16[32,288], index: 4, kind: input, shape index: {}]   ;;  %s3497_s5 = inlined_call_operand.vmem [shape: f32[32,1], index: 5, kind: input, shape index: {}]   ;;  %s3498_s6 = inlined_call_operand.vmem [shape: f32[2,32,100], index: 6, kind: output, shape index: {}]  }
   0x1 LB: > { %s2085_s22 = sadd.s32 4294967295, %s2592_s21   ;;  %p2089_p0 = scmp.ge.s32.totalorder %s2592_s21, 1  ;;  %s2592_s21 = sphi %s2638_s21, %s16_s21  }
   0x2   : > { %p212_p1 = scmp.lt.s32.totalorder %s2592_s21, 3 }
   0x4   : > { %p213_p2 = pnand %p2089_p0, %p212_p1 }
   0x5   : > { %p242_p3 = scmp.lt.s32.totalorder (!%p213_p2), %s2085_s22, 1  ;;  %s2594_s27 = smov (!%p213_p2), 1  }
   0x6   : > { %216 = sbr.rel (%p213_p2) target bundleno = 2307 (0x903), region = 44  ;;  %s2595_s28 = smov (!%p213_p2), 9  }
   0x7   : > { %s2596_s29 = smov (!%p213_p2), 118   ;;  %s2597_s30 = smov (!%p213_p2), 119  }
   0x8   : > { %s2598_s7 = smov (!%p213_p2), 10   ;;  %s2599_s8 = smov (!%p213_p2), 127  }
   0x9   : > { %s2600_s9 = smov (!%p213_p2), 117   ;;  %s2601_s10 = smov (!%p213_p2), 11  }
   0xb   : > { %s3508_s22 = smov (!%p242_p3, %s2085_s22), 1  ;;  %vm257_vm0 = vcmask 814080   ;;  %vm323_vm1 = vcmask 7168   ;;  %vm312_vm3 = vcmask 72704   ;;  %vm356_vm5 = vcmask 736256   ;;  %v376_v17 = vld [vmem:[%s3495_s3] sm:$0xff] }
   0xc   : > { %s2506_s23 = sshll.u32 %s3508_s22, 4  ;;  %vm2692_vm2 = vmneg %vm323_vm1  ;;  %v378_v18 = vld [vmem:[%s3495_s3 + $0x10] sm:$0xff]  ;;  %v2602_v19 = vmov 0   ;;  %vm345_vm6 = vcmask 744448   ;;  %vm301_vm7 = vcmask 80896   ;;  %vm334_vm9 = vcmask 809984  }
   0xd   : > { %s246_s26 = scalar_lea.vmem %s3492_s0, %s2506_s23  ;;  %vm2700_vm4 = vmneg %vm312_vm3  ;;  %2583 = vset.pattern.permute.xlu0 %v2602_v19  ;;  %2581 = vset.pattern.permute.xlu1 %v2602_v19  ;;  %v377_v30 = vld [vmem:[%s3495_s3 + $0x8] sm:$0xff]  ;;  %v379_v31 = vld [vmem:[%s3495_s3 + $0x18] sm:$0xff]  ;;  %vm289_vm10 = vcmask 89088   ;;  %vm367_vm11 = vcmask 728064   ;;  %vm430_vm13 = vcmask 261120   ;;  %s2507_s13 = sshll.u32 %s3508_s22, 5 }
   0xe   : > { %v255_v0 = vld [vmem:[%s246_s26 + $0x8] sm:$0xf]  ;;  %v256_v1 = vld [vmem:[%s246_s26 + $0xc] sm:$0xf]  ;;  %v253_v2 = vld [vmem:[%s246_s26] sm:$0xf]  ;;  %2582 = vset.pattern.permute.xlu2 %v2602_v19  ;;  %s251_s16 = scalar_lea.vmem %s3498_s6, %s2507_s13 }
   0xf   : > { %260 = vst.msk [vmem:[#allocation2 + $0x8] sm:$0xf] %vm257_vm0, %v255_v0  ;;  %v254_v3 = vld [vmem:[%s246_s26 + $0x4] sm:$0xf]  ;;  %vm2717_vm8 = vmneg %vm301_vm7  ;;  %v2106_v38 = vld [vmem:[%s3494_s2 + $0xc] sm:$0xf0] }
  0x10   : > { %261 = vst.msk [vmem:[#allocation2 + $0xc] sm:$0xf] %vm257_vm0, %v256_v1  ;;  %vm2734_vm12 = vmneg %vm289_vm10  ;;  %v2508_v37 = vld [vmem:[%s3494_s2 + $0x4] sm:$0xf]  ;;  %v2112_v40 = vld [vmem:[%s3494_s2 + $0x8] sm:$0xf] }
  0x11   : > { %258 = vst.msk [vmem:[#allocation2] sm:$0xf] %vm257_vm0, %v253_v2  ;;  %v2510_v41 = vld [vmem:[%s3494_s2 + $0x10] sm:$0xf0]  ;;  %v2109_v42 = vor.u32 %v2508_v37, %v2106_v38  ;;  %v2104_v43 = vld [vmem:[%s3494_s2] sm:$0xf] }
  0x12   : > { %259 = vst.msk [vmem:[#allocation2 + $0x4] sm:$0xf] %vm257_vm0, %v254_v3  ;;  %v2509_v44 = vld [vmem:[%s3494_s2 + $0x8] sm:$0xf0]  ;;  %v2113_v45 = vor.u32 %v2510_v41, %v2112_v40  ;;  %v2511_v48 = vld [vmem:[%s3494_s2 + $0x1c] sm:$0xf] }
  0x13   : > { %v2105_v47 = vor.u32 %v2509_v44, %v2104_v43  ;;  %v2118_v49 = vld [vmem:[%s3494_s2 + $0x24] sm:$0xf0]  ;;  %v2124_v50 = vld [vmem:[%s3494_s2 + $0x20] sm:$0xf]  ;;  %v2513_v51 = vld [vmem:[%s3494_s2 + $0x28] sm:$0xf0] }
  0x14   : > { %v2121_v52 = vor.u32 %v2511_v48, %v2118_v49  ;;  %v2116_v53 = vld [vmem:[%s3494_s2 + $0x18] sm:$0xf]  ;;  %v2512_v54 = vld [vmem:[%s3494_s2 + $0x20] sm:$0xf0]  ;;  %v2125_v55 = vor.u32 %v2513_v51, %v2124_v50  ;;  %v2787_v2 = vld [vmem:[%s3493_s1] ss:$0 sm:$0xff] }
  0x15   : > { %v2117_v56 = vor.u32 %v2512_v54, %v2116_v53  ;;  %v2160_v54 = vld [vmem:[%s3495_s3 + $0x20] sm:$0xff]  ;;  %v2466_v11 = vld [vmem:[%s3496_s4 + $0xc] sm:$0xf0]  ;;  %v2472_v23 = vld [vmem:[%s3496_s4 + $0x8] sm:$0xf] }
  0x16   : > { %v2561_v34 = vld [vmem:[%s3496_s4 + $0x28] sm:$0xf0] }
  0x17   : > { %v2656_v4 = vld [vmem:[#allocation2 + $0x8] sm:$0xff] }
  0x18   : > { %321 = vrot.lane.b32.xlu0 %v2656_v4, %s2594_s27  ;;  %310 = vrot.lane.b32.xlu2 %v2656_v4, %s2595_s28 }
  0x19   : > { %v2660_v5 = vld [vmem:[#allocation2] sm:$0xff] }
  0x1a   : > { %319 = vrot.lane.b32.xlu1 %v2660_v5, %s2594_s27  ;;  %v271_v0 = vld [vmem:[#allocation2] sm:$0xff]  }
  0x1b   : > { %v507_v19 = vunpack.c.h.bf16 %v271_v0 }
  0x20   : > { %354 = vrot.lane.b32.xlu0 %v2656_v4, %s2596_s29  ;;  %343 = vrot.lane.b32.xlu2 %v2656_v4, %s2597_s30 }
  0x22   : > { %352 = vrot.lane.b32.xlu1 %v2660_v5, %s2596_s29 }
  0x28   : > { %308 = vrot.lane.b32.xlu0 %v2660_v5, %s2595_s28  ;;  %299 = vrot.lane.b32.xlu2 %v2656_v4, %s2598_s7 }
  0x2a   : > { %341 = vrot.lane.b32.xlu1 %v2660_v5, %s2597_s30 }
  0x30   : > { %332 = vrot.lane.b32.xlu0 %v2656_v4, %s2599_s8  ;;  %330 = vrot.lane.b32.xlu2 %v2660_v5, %s2599_s8 }
  0x32   : > { %297 = vrot.lane.b32.xlu1 %v2660_v5, %s2598_s7 }
  0x38   : > { %365 = vrot.lane.b32.xlu0 %v2656_v4, %s2600_s9  ;;  %363 = vrot.lane.b32.xlu2 %v2660_v5, %s2600_s9 }
  0x3a   : > { %287 = vrot.lane.b32.xlu1 %v2656_v4, %s2601_s10 }
  0x40   : > { %285 = vrot.lane.b32.xlu0 %v2660_v5, %s2601_s10  ;;  %397 = vperm.xlu2 %2582, %v379_v31  }
  0x42   : > { %392 = vperm.xlu1 %2581, %v378_v18  }
  0x48   : > { %382 = vperm.xlu0 %2583, %v376_v17  }
  0x4a   : > { %387 = vperm.xlu1 %2581, %v377_v30  }
  0x72   : > { %v311_v6 = vpop.permute.xlu2 %310 }
  0x7a   : > { %v344_v10 = vpop.permute.xlu2 %343 }
  0x7b   : > { %v350_v21 = vsel %vm345_vm6, %v344_v10, 0 }
  0x82   : > { %v300_v16 = vpop.permute.xlu2 %299 }
  0x8a   : > { %v322_v8 = vpop.permute.xlu0 %321  ;;  %v331_v25 = vpop.permute.xlu2 %330 }
  0x8b   : > { %2127 = vmatpush.bf16.msk.msra.mxu0 %vm2692_vm2, %v322_v8  ;;  %v336_v29 = vsel %vm334_vm9, %v331_v25, 0 }
  0x8c   : > { %v320_v9 = vpop.permute.xlu1 %319 }
  0x8f   : > { %2129 = vmatpush.bf16.msk.msra.mxu0 %vm2692_vm2, %v320_v9 }
  0x92   : > { %v355_v12 = vpop.permute.xlu0 %354  ;;  %v364_v33 = vpop.permute.xlu2 %363 }
  0x93   : > { %2131 = vmatpush.bf16.msk.msra.mxu0 %vm2700_vm4, %v311_v6  ;;  %v361_v13 = vsel %vm356_vm5, %v355_v12, 0  ;;  %v369_v39 = vsel %vm367_vm11, %v364_v33, 0  ;;  %v506_v6 = vunpack.c.l.bf16 %v271_v0 }
  0x94   : > { %456 = vmatpush.bf16.msra.mxu1 %v361_v13  ;;  %v353_v14 = vpop.permute.xlu1 %352 }
  0x95   : > { %v358_v15 = vsel %vm356_vm5, %v353_v14, 0 }
  0x98   : > { %457 = vmatpush.bf16.msra.mxu1 %v358_v15 }
  0x9a   : > { %v309_v20 = vpop.permute.xlu0 %308 }
  0x9b   : > { %2133 = vmatpush.bf16.msk.msra.mxu0 %vm2700_vm4, %v309_v20 }
  0x9c   : > { %458 = vmatpush.bf16.msra.mxu1 %v350_v21  ;;  %v342_v22 = vpop.permute.xlu1 %341 }
  0x9d   : > { %v347_v24 = vsel %vm345_vm6, %v342_v22, 0 }
  0x9f   : > { %2135 = vmatpush.bf16.msk.msra.mxu0 %vm2717_vm8, %v300_v16 }
  0xa0   : > { %459 = vmatpush.bf16.msra.mxu1 %v347_v24 }
  0xa2   : > { %v333_v26 = vpop.permute.xlu0 %332 }
  0xa3   : > { %v339_v27 = vsel %vm334_vm9, %v333_v26, 0 }
  0xa4   : > { %460 = vmatpush.bf16.msra.mxu1 %v339_v27  ;;  %v298_v28 = vpop.permute.xlu1 %297 }
  0xa5   : > { %2137 = vmatpush.bf16.msk.msra.mxu0 %vm2717_vm8, %v298_v28 }
  0xa8   : > { %461 = vmatpush.bf16.msra.mxu1 %v336_v29  ;;  %v273_v29 = vld [vmem:[#allocation2 + $0x8] sm:$0xff]  }
  0xa9   : > { %v509_v48 = vunpack.c.h.bf16 %v273_v29 }
  0xaa   : > { %v366_v32 = vpop.permute.xlu0 %365 }
  0xab   : > { %v372_v35 = vsel %vm367_vm11, %v366_v32, 0  ;;  %v398_v32 = vpop.permute.xlu2 %397 }
  0xac   : > { %462 = vmatpush.bf16.msra.mxu1 %v2656_v4  ;;  %481 = vmatpush.bf16.msra.mxu2 %v372_v35  ;;  %v288_v36 = vpop.permute.xlu1 %287  ;;  %v508_v35 = vunpack.c.l.bf16 %v273_v29  ;;  %v2521_v29 = vld [vmem:[%s3494_s2 + $0x58] sm:$0xf0] }
  0xad   : > { %2139 = vmatpush.bf16.msk.msra.mxu0 %vm2734_vm12, %v288_v36 }
  0xb0   : > { %463 = vmatpush.bf16.msra.mxu1 %v2660_v5  ;;  %482 = vmatpush.bf16.msra.mxu2 %v369_v39 }
  0xb2   : > { %v286_v46 = vpop.permute.xlu0 %285 }
  0xb3   : > { %2141 = vmatpush.bf16.msk.msra.mxu0 %vm2734_vm12, %v286_v46  ;;  %464 = vmatmul.bf16.vlgmr.msra.gmra.mxu1 %v2109_v42 }
  0xb4   : > { %2142 = vmatmul.msk.bf16.vlgmr.msra.gmra.mxu2 %vm430_vm13, %v2113_v45  ;;  %v393_v57 = vpop.permute.xlu1 %392 }
  0xb6   : > { %445 = vmatmul.bf16.vlgmr.msra.gmra.mxu0 %v2105_v47 }
  0xba   : > { %v383_v59 = vpop.permute.xlu0 %382 }
  0xbc   : > { %v388_v4 = vpop.permute.xlu1 %387 }
  0xc3   : > { %469 = vmatmul.bf16.gmra.mxu1 %v2121_v52 }
  0xc4   : > { %2143 = vmatmul.msk.bf16.gmra.mxu2 %vm430_vm13, %v2125_v55  ;;  %v2162_v55 = vld [vmem:[%s3495_s3 + $0x30] sm:$0xff] }
  0xc6   : > { %450 = vmatmul.bf16.gmra.mxu0 %v2117_v56  ;;  %v2163_v56 = vld [vmem:[%s3495_s3 + $0x38] sm:$0xff] }
 0x130   : > { %v465_v58 = vpop.f32.mrf.mxu1 }
 0x133   : > { %v446_v60 = vpop.f32.mrf.mxu0 }
 0x134   : > { %v447_v61 = vadd.f32 %v446_v60, %v383_v59 }
 0x136   : > { %v466_v62 = vadd.f32 %v465_v58, %v447_v61 }
 0x137   : > { %v484_v63 = vpop.f32.mrf.mxu2 }
 0x138   : > { %v485_v1 = vadd.f32 %v484_v63, %v466_v62  ;;  %v467_v3 = vpop.f32.mrf.mxu1 }
 0x13a   : > { %vm494_vm14 = vcmp.gt.f32.partialorder %v485_v1, 0.0  ;;  %v498_v5 = vmul.f32 0.2, %v485_v1 }
 0x13b   : > { %v448_v8 = vpop.f32.mrf.mxu0 }
 0x13c   : > { %v502_v9 = vsel %vm494_vm14, %v485_v1, %v498_v5  ;;  %v449_v10 = vadd.f32 %v448_v8, %v388_v4 }
 0x13d   : > { %v513_v12 = vmul.f32 %v2787_v2, %v502_v9 }
 0x13e   : > { %v468_v13 = vadd.f32 %v467_v3, %v449_v10 }
 0x13f   : > { %v517_v14 = vadd.f32 %v513_v12, %v506_v6  ;;  %v486_v15 = vpop.f32.mrf.mxu2 }
 0x140   : > { %v487_v16 = vadd.f32 %v486_v15, %v468_v13  ;;  %v470_v20 = vpop.f32.mrf.mxu1  ;;  %v2174_v13 = vld [vmem:[%s3494_s2 + $0x38] sm:$0xf] }
 0x141   : > { %v521_v17 = vpack.c.bf16 %v517_v14, %v517_v14  ;;  %v2518_v14 = vld [vmem:[%s3494_s2 + $0x40] sm:$0xf0] }
 0x142   : > { %vm495_vm15 = vcmp.gt.f32.partialorder %v487_v16, 0.0  ;;  %v499_v18 = vmul.f32 0.2, %v487_v16 }
 0x143   : > { %525 = vst.msk [vmem:[#allocation2] sm:$0xf] %vm257_vm0, %v521_v17  ;;  %v451_v21 = vpop.f32.mrf.mxu0 }
 0x144   : > { %v503_v22 = vsel %vm495_vm15, %v487_v16, %v499_v18  ;;  %v452_v24 = vadd.f32 %v451_v21, %v393_v57  ;;  %v2161_v57 = vld [vmem:[%s3495_s3 + $0x28] sm:$0xff] }
 0x145   : > { %v514_v25 = vmul.f32 %v2787_v2, %v503_v22 }
 0x146   : > { %v471_v26 = vadd.f32 %v470_v20, %v452_v24  ;;  %v2166_v24 = vld [vmem:[%s3494_s2 + $0x30] sm:$0xf] }
 0x147   : > { %v518_v27 = vadd.f32 %v514_v25, %v507_v19  ;;  %v489_v28 = vpop.f32.mrf.mxu2  ;;  %v2175_v19 = vor.u32 %v2518_v14, %v2174_v13  ;;  %v2517_v25 = vld [vmem:[%s3494_s2 + $0x38] sm:$0xf0] }
 0x148   : > { %v490_v30 = vadd.f32 %v489_v28, %v471_v26  ;;  %v472_v40 = vpop.f32.mrf.mxu1  ;;  %v2516_v26 = vld [vmem:[%s3494_s2 + $0x34] sm:$0xf]  ;;  %v2186_v28 = vld [vmem:[%s3494_s2 + $0x50] sm:$0xf] }
 0x149   : > { %v522_v31 = vpack.c.bf16 %v518_v27, %v518_v27  ;;  %v2168_v27 = vld [vmem:[%s3494_s2 + $0x3c] sm:$0xf0] }
 0x14a   : > { %vm496_vm1 = vcmp.gt.f32.partialorder %v490_v30, 0.0  ;;  %v500_v33 = vmul.f32 0.2, %v490_v30 }
 0x14b   : > { %526 = vst.msk [vmem:[#allocation2 + $0x4] sm:$0xf] %vm257_vm0, %v522_v31  ;;  %v453_v36 = vpop.f32.mrf.mxu0  ;;  %v2167_v31 = vor.u32 %v2517_v25, %v2166_v24 }
 0x14c   : > { %v504_v37 = vsel %vm496_vm1, %v490_v30, %v500_v33  ;;  %v454_v38 = vadd.f32 %v453_v36, %v398_v32  ;;  %v2171_v32 = vor.u32 %v2516_v26, %v2168_v27  ;;  %v2187_v33 = vor.u32 %v2521_v29, %v2186_v28  ;;  %v2520_v36 = vld [vmem:[%s3494_s2 + $0x50] sm:$0xf0] }
 0x14d   : > { %v515_v39 = vmul.f32 %v2787_v2, %v504_v37  ;;  %v2519_v37 = vld [vmem:[%s3494_s2 + $0x4c] sm:$0xf] }
 0x14e   : > { %v473_v41 = vadd.f32 %v472_v40, %v454_v38  ;;  %v2180_v38 = vld [vmem:[%s3494_s2 + $0x54] sm:$0xf0] }
 0x14f   : > { %v519_v42 = vadd.f32 %v515_v39, %v508_v35  ;;  %v491_v43 = vpop.f32.mrf.mxu2  ;;  %v2178_v35 = vld [vmem:[%s3494_s2 + $0x48] sm:$0xf]  ;;  %v2183_v40 = vor.u32 %v2519_v37, %v2180_v38  ;;  %v2224_v38 = vld [vmem:[%s3495_s3 + $0x50] sm:$0xff] }
 0x150   : > { %v492_v44 = vadd.f32 %v491_v43, %v473_v41  ;;  %v2179_v39 = vor.u32 %v2520_v36, %v2178_v35 }
 0x151   : > { %v523_v45 = vpack.c.bf16 %v519_v42, %v519_v42 }
 0x152   : > { %vm497_vm3 = vcmp.gt.f32.partialorder %v492_v44, 0.0  ;;  %v501_v46 = vmul.f32 0.2, %v492_v44  ;;  %v2794_v47 = vld [vmem:[#allocation2] sm:$0xff] }
 0x153   : > { %527 = vst.msk [vmem:[#allocation2 + $0x8] sm:$0xf] %vm257_vm0, %v523_v45  ;;  %612 = vrot.lane.b32.xlu0 %v2794_v47, %s2596_s29  ;;  %582 = vrot.lane.b32.xlu2 %v2794_v47, %s2594_s27 }
 0x154   : > { %v505_v49 = vsel %vm497_vm3, %v492_v44, %v501_v46 }
 0x155   : > { %v516_v50 = vmul.f32 %v2787_v2, %v505_v49 }
 0x157   : > { %v520_v51 = vadd.f32 %v516_v50, %v509_v48  ;;  %v538_v50 = vld [vmem:[#allocation2] sm:$0xff]  }
 0x159   : > { %v524_v52 = vpack.c.bf16 %v520_v51, %v520_v51 }
 0x15b   : > { %528 = vst.msk [vmem:[#allocation2 + $0xc] sm:$0xf] %vm257_vm0, %v524_v52  ;;  %572 = vrot.lane.b32.xlu0 %v2794_v47, %s2595_s28 }
 0x162   : > { %v2805_v53 = vld [vmem:[#allocation2 + $0x8] sm:$0xff] }
 0x163   : > { %614 = vrot.lane.b32.xlu1 %v2805_v53, %s2596_s29  ;;  %594 = vrot.lane.b32.xlu0 %v2805_v53, %s2599_s8  ;;  %v540_v14 = vld [vmem:[#allocation2 + $0x8] sm:$0xff]  }
 0x164   : > { %584 = vrot.lane.b32.xlu2 %v2805_v53, %s2594_s27 }
 0x16b   : > { %574 = vrot.lane.b32.xlu1 %v2805_v53, %s2595_s28  ;;  %554 = vrot.lane.b32.xlu0 %v2805_v53, %s2601_s10 }
 0x16c   : > { %604 = vrot.lane.b32.xlu2 %v2805_v53, %s2597_s30 }
 0x173   : > { %602 = vrot.lane.b32.xlu1 %v2794_v47, %s2597_s30  ;;  %622 = vrot.lane.b32.xlu0 %v2794_v47, %s2600_s9 }
 0x174   : > { %564 = vrot.lane.b32.xlu2 %v2805_v53, %s2598_s7 }
 0x17b   : > { %562 = vrot.lane.b32.xlu1 %v2794_v47, %s2598_s7  ;;  %641 = vperm.xlu0 %2583, %v2160_v54  }
 0x17c   : > { %592 = vrot.lane.b32.xlu2 %v2794_v47, %s2599_s8 }
 0x183   : > { %552 = vrot.lane.b32.xlu1 %v2794_v47, %s2601_s10 }
 0x184   : > { %624 = vrot.lane.b32.xlu2 %v2805_v53, %s2600_s9 }
 0x18b   : > { %651 = vperm.xlu1 %2581, %v2162_v55  }
 0x18c   : > { %656 = vperm.xlu2 %2582, %v2163_v56  }
 0x193   : > { %646 = vperm.xlu1 %2581, %v2161_v57   ;;  %v764_v57 = vunpack.c.l.bf16 %v538_v50 }
 0x1ad   : > { %v583_v58 = vpop.permute.xlu2 %582 }
 0x1be   : > { %v585_v59 = vpop.permute.xlu2 %584 }
 0x1bf   : > { %2189 = vmatpush.bf16.msk.msra.mxu3 %vm2692_vm2, %v585_v59 }
 0x1c3   : > { %2191 = vmatpush.bf16.msk.msra.mxu3 %vm2692_vm2, %v583_v58 }
 0x1c5   : > { %v613_v60 = vpop.permute.xlu0 %612 }
 0x1c6   : > { %v605_v61 = vpop.permute.xlu2 %604  ;;  %v617_v5 = vsel %vm356_vm5, %v613_v60, 0 }
 0x1c7   : > { %v610_v10 = vsel %vm345_vm6, %v605_v61, 0 }
 0x1cd   : > { %v573_v62 = vpop.permute.xlu0 %572 }
 0x1ce   : > { %v565_v63 = vpop.permute.xlu2 %564 }
 0x1d5   : > { %v615_v0 = vpop.permute.xlu1 %614  ;;  %v595_v1 = vpop.permute.xlu0 %594 }
 0x1d6   : > { %v593_v3 = vpop.permute.xlu2 %592  ;;  %v620_v4 = vsel %vm356_vm5, %v615_v0, 0  ;;  %v600_v20 = vsel %vm334_vm9, %v595_v1, 0 }
 0x1d7   : > { %714 = vmatpush.bf16.msrb.mxu2 %v620_v4  ;;  %v597_v22 = vsel %vm334_vm9, %v593_v3, 0 }
 0x1db   : > { %715 = vmatpush.bf16.msrb.mxu2 %v617_v5  ;;  %v765_v5 = vunpack.c.h.bf16 %v538_v50 }
 0x1dd   : > { %v575_v6 = vpop.permute.xlu1 %574  ;;  %v555_v8 = vpop.permute.xlu0 %554 }
 0x1de   : > { %v625_v9 = vpop.permute.xlu2 %624  ;;  %2193 = vmatpush.bf16.msk.msra.mxu3 %vm2700_vm4, %v575_v6 }
 0x1df   : > { %716 = vmatpush.bf16.msrb.mxu2 %v610_v10  ;;  %v630_v12 = vsel %vm367_vm11, %v625_v9, 0 }
 0x1e0   : > { %739 = vmatpush.bf16.msrb.mxu0 %v630_v12 }
 0x1e2   : > { %2195 = vmatpush.bf16.msk.msra.mxu3 %vm2700_vm4, %v573_v62 }
 0x1e5   : > { %v603_v15 = vpop.permute.xlu1 %602  ;;  %v623_v16 = vpop.permute.xlu0 %622 }
 0x1e6   : > { %2197 = vmatpush.bf16.msk.msra.mxu3 %vm2717_vm8, %v565_v63  ;;  %v607_v17 = vsel %vm345_vm6, %v603_v15, 0  ;;  %v627_v18 = vsel %vm367_vm11, %v623_v16, 0  ;;  %v657_v16 = vpop.permute.xlu2 %656 }
 0x1e7   : > { %717 = vmatpush.bf16.msrb.mxu2 %v607_v17  ;;  %740 = vmatpush.bf16.msrb.mxu0 %v627_v18 }
 0x1ea   : > { %2204 = vmatmul.msk.bf16.vlgmr.msrb.gmra.mxu0 %vm430_vm13, %v2175_v19 }
 0x1eb   : > { %718 = vmatpush.bf16.msrb.mxu2 %v600_v20 }
 0x1ed   : > { %v563_v21 = vpop.permute.xlu1 %562  ;;  %v642_v43 = vpop.permute.xlu0 %641 }
 0x1ee   : > { %2199 = vmatpush.bf16.msk.msra.mxu3 %vm2717_vm8, %v563_v21  ;;  %v766_v21 = vunpack.c.l.bf16 %v540_v14 }
 0x1ef   : > { %719 = vmatpush.bf16.msrb.mxu2 %v597_v22 }
 0x1f2   : > { %2201 = vmatpush.bf16.msk.msra.mxu3 %vm2734_vm12, %v555_v8 }
 0x1f3   : > { %720 = vmatpush.bf16.msrb.mxu2 %v2805_v53 }
 0x1f5   : > { %v553_v30 = vpop.permute.xlu1 %552 }
 0x1f6   : > { %2203 = vmatpush.bf16.msk.msra.mxu3 %vm2734_vm12, %v553_v30 }
 0x1f7   : > { %721 = vmatpush.bf16.msrb.mxu2 %v2794_v47 }
 0x1f9   : > { %703 = vmatmul.bf16.vlgmr.msra.gmra.mxu3 %v2167_v31 }
 0x1fa   : > { %722 = vmatmul.bf16.vlgmr.msrb.gmra.mxu2 %v2171_v32  ;;  %2205 = vmatmul.msk.bf16.gmra.mxu0 %vm430_vm13, %v2187_v33  ;;  %v767_v32 = vunpack.c.h.bf16 %v540_v14  ;;  %v2527_v14 = vld [vmem:[%s3494_s2 + $0x7c] sm:$0xf] }
 0x1fd   : > { %v652_v41 = vpop.permute.xlu1 %651 }
 0x205   : > { %v647_v49 = vpop.permute.xlu1 %646 }
 0x209   : > { %708 = vmatmul.bf16.gmra.mxu3 %v2179_v39  ;;  %v2223_v39 = vld [vmem:[%s3495_s3 + $0x48] sm:$0xff] }
 0x20a   : > { %727 = vmatmul.bf16.gmra.mxu2 %v2183_v40  ;;  %v2225_v40 = vld [vmem:[%s3495_s3 + $0x58] sm:$0xff] }
 0x267   : > { %v742_v42 = vpop.f32.mrf.mxu0 }
 0x26f   : > { %v744_v52 = vpop.f32.mrf.mxu0 }
 0x277   : > { %v747_v8 = vpop.f32.mrf.mxu0 }
 0x27c   : > { %v704_v44 = vpop.f32.mrf.mxu3 }
 0x27d   : > { %v705_v45 = vadd.f32 %v704_v44, %v642_v43  ;;  %v723_v46 = vpop.f32.mrf.mxu2 }
 0x27f   : > { %v724_v47 = vadd.f32 %v723_v46, %v705_v45  ;;  %v749_v26 = vpop.f32.mrf.mxu0 }
 0x281   : > { %v743_v48 = vadd.f32 %v742_v42, %v724_v47 }
 0x283   : > { %vm752_vm7 = vcmp.gt.f32.partialorder %v743_v48, 0.0  ;;  %v756_v51 = vmul.f32 0.2, %v743_v48 }
 0x284   : > { %v706_v53 = vpop.f32.mrf.mxu3 }
 0x285   : > { %v760_v54 = vsel %vm752_vm7, %v743_v48, %v756_v51  ;;  %v707_v55 = vadd.f32 %v706_v53, %v647_v49  ;;  %v725_v56 = vpop.f32.mrf.mxu2 }
 0x286   : > { %v768_v58 = vmul.f32 %v2787_v2, %v760_v54 }
 0x287   : > { %v726_v59 = vadd.f32 %v725_v56, %v707_v55 }
 0x288   : > { %v772_v60 = vadd.f32 %v768_v58, %v764_v57 }
 0x289   : > { %v745_v61 = vadd.f32 %v744_v52, %v726_v59 }
 0x28a   : > { %v776_v62 = vpack.c.bf16 %v772_v60, %v772_v60 }
 0x28b   : > { %vm753_vm10 = vcmp.gt.f32.partialorder %v745_v61, 0.0  ;;  %v757_v63 = vmul.f32 0.2, %v745_v61 }
 0x28c   : > { %780 = vst.msk [vmem:[#allocation2] sm:$0xf] %vm257_vm0, %v776_v62  ;;  %v709_v0 = vpop.f32.mrf.mxu3  ;;  %v2230_v62 = vld [vmem:[%s3494_s2 + $0x6c] sm:$0xf0] }
 0x28d   : > { %v761_v1 = vsel %vm753_vm10, %v745_v61, %v757_v63  ;;  %v710_v3 = vadd.f32 %v709_v0, %v652_v41  ;;  %v728_v4 = vpop.f32.mrf.mxu2  ;;  %v2222_v41 = vld [vmem:[%s3495_s3 + $0x40] sm:$0xff] }
 0x28e   : > { %v769_v6 = vmul.f32 %v2787_v2, %v761_v1  ;;  %v2524_v61 = vld [vmem:[%s3494_s2 + $0x64] sm:$0xf] }
 0x28f   : > { %v729_v9 = vadd.f32 %v728_v4, %v710_v3  ;;  %v2233_v0 = vor.u32 %v2524_v61, %v2230_v62  ;;  %v2228_v3 = vld [vmem:[%s3494_s2 + $0x60] sm:$0xf]  ;;  %v2525_v4 = vld [vmem:[%s3494_s2 + $0x68] sm:$0xf0] }
 0x290   : > { %v773_v10 = vadd.f32 %v769_v6, %v765_v5  ;;  %v2236_v5 = vld [vmem:[%s3494_s2 + $0x68] sm:$0xf]  ;;  %v2526_v6 = vld [vmem:[%s3494_s2 + $0x70] sm:$0xf0] }
 0x291   : > { %v748_v12 = vadd.f32 %v747_v8, %v729_v9 }
 0x292   : > { %v777_v13 = vpack.c.bf16 %v773_v10, %v773_v10  ;;  %v2229_v10 = vor.u32 %v2525_v4, %v2228_v3 }
 0x293   : > { %vm754_vm14 = vcmp.gt.f32.partialorder %v748_v12, 0.0  ;;  %v758_v15 = vmul.f32 0.2, %v748_v12 }
 0x294   : > { %781 = vst.msk [vmem:[#allocation2 + $0x4] sm:$0xf] %vm257_vm0, %v777_v13  ;;  %v711_v17 = vpop.f32.mrf.mxu3  ;;  %v2237_v13 = vor.u32 %v2526_v6, %v2236_v5 }
 0x295   : > { %v762_v18 = vsel %vm754_vm14, %v748_v12, %v758_v15  ;;  %v712_v19 = vadd.f32 %v711_v17, %v657_v16  ;;  %v730_v20 = vpop.f32.mrf.mxu2  ;;  %v2242_v15 = vld [vmem:[%s3494_s2 + $0x84] sm:$0xf0]  ;;  %v2240_v17 = vld [vmem:[%s3494_s2 + $0x78] sm:$0xf] }
 0x296   : > { %v770_v22 = vmul.f32 %v2787_v2, %v762_v18  ;;  %v2245_v16 = vor.u32 %v2527_v14, %v2242_v15  ;;  %v2528_v18 = vld [vmem:[%s3494_s2 + $0x80] sm:$0xf0] }
 0x297   : > { %v731_v24 = vadd.f32 %v730_v20, %v712_v19  ;;  %v2248_v19 = vld [vmem:[%s3494_s2 + $0x80] sm:$0xf]  ;;  %v2529_v20 = vld [vmem:[%s3494_s2 + $0x88] sm:$0xf0] }
 0x298   : > { %v774_v25 = vadd.f32 %v770_v22, %v766_v21  ;;  %v2241_v21 = vor.u32 %v2528_v18, %v2240_v17  ;;  %v2249_v22 = vor.u32 %v2529_v20, %v2248_v19  ;;  %v2286_v20 = vld [vmem:[%s3495_s3 + $0x70] sm:$0xff] }
 0x299   : > { %v750_v27 = vadd.f32 %v749_v26, %v731_v24 }
 0x29a   : > { %v778_v28 = vpack.c.bf16 %v774_v25, %v774_v25 }
 0x29b   : > { %vm755_vm15 = vcmp.gt.f32.partialorder %v750_v27, 0.0  ;;  %v759_v29 = vmul.f32 0.2, %v750_v27  ;;  %v2914_v30 = vld [vmem:[#allocation2] sm:$0xff] }
 0x29c   : > { %782 = vst.msk [vmem:[#allocation2 + $0x8] sm:$0xf] %vm257_vm0, %v778_v28  ;;  %867 = vrot.lane.b32.xlu0 %v2914_v30, %s2596_s29 }
 0x29d   : > { %v763_v31 = vsel %vm755_vm15, %v750_v27, %v759_v29 }
 0x29e   : > { %v771_v33 = vmul.f32 %v2787_v2, %v763_v31 }
 0x2a0   : > { %v775_v35 = vadd.f32 %v771_v33, %v767_v32 }
 0x2a2   : > { %v779_v36 = vpack.c.bf16 %v775_v35, %v775_v35 }
 0x2a4   : > { %783 = vst.msk [vmem:[#allocation2 + $0xc] sm:$0xf] %vm257_vm0, %v779_v36  ;;  %837 = vrot.lane.b32.xlu0 %v2914_v30, %s2594_s27  ;;  %v793_v36 = vld [vmem:[#allocation2] sm:$0xff]  }
 0x2ab   : > { %v2531_v37 = vld [vmem:[#allocation2 + $0x8] sm:$0xff] }
 0x2ac   : > { %839 = vrot.lane.b32.xlu1 %v2531_v37, %s2594_s27  ;;  %869 = vrot.lane.b32.xlu2 %v2531_v37, %s2596_s29  ;;  %v795_v61 = vld [vmem:[#allocation2 + $0x8] sm:$0xff]  }
 0x2ad   : > { %849 = vrot.lane.b32.xlu0 %v2531_v37, %s2599_s8  ;;  %v1021_v3 = vunpack.c.l.bf16 %v795_v61  ;;  %v1022_v15 = vunpack.c.h.bf16 %v795_v61  ;;  %v2310_v61 = vld [vmem:[%s3494_s2 + $0xb0] sm:$0xf] }
 0x2b4   : > { %859 = vrot.lane.b32.xlu2 %v2531_v37, %s2597_s30  ;;  %857 = vrot.lane.b32.xlu1 %v2914_v30, %s2597_s30 }
 0x2b5   : > { %819 = vrot.lane.b32.xlu0 %v2531_v37, %s2598_s7 }
 0x2bc   : > { %829 = vrot.lane.b32.xlu2 %v2531_v37, %s2595_s28  ;;  %827 = vrot.lane.b32.xlu1 %v2914_v30, %s2595_s28 }
 0x2bd   : > { %809 = vrot.lane.b32.xlu0 %v2531_v37, %s2601_s10 }
 0x2c4   : > { %847 = vrot.lane.b32.xlu2 %v2914_v30, %s2599_s8  ;;  %817 = vrot.lane.b32.xlu1 %v2914_v30, %s2598_s7 }
 0x2c5   : > { %906 = vperm.xlu0 %2583, %v2224_v38  }
 0x2cc   : > { %879 = vrot.lane.b32.xlu2 %v2531_v37, %s2600_s9  ;;  %877 = vrot.lane.b32.xlu1 %v2914_v30, %s2600_s9 }
 0x2cd   : > { %901 = vperm.xlu0 %2583, %v2223_v39  }
 0x2d4   : > { %807 = vrot.lane.b32.xlu2 %v2914_v30, %s2601_s10  ;;  %911 = vperm.xlu1 %2581, %v2225_v40   ;;  %v1019_v40 = vunpack.c.l.bf16 %v793_v36 }
 0x2dc   : > { %896 = vperm.xlu2 %2582, %v2222_v41  }
 0x306   : > { %v870_v42 = vpop.permute.xlu2 %869 }
 0x307   : > { %v875_v43 = vsel %vm356_vm5, %v870_v42, 0 }
 0x308   : > { %969 = vmatpush.bf16.msrb.mxu3 %v875_v43 }
 0x30e   : > { %v860_v44 = vpop.permute.xlu2 %859  ;;  %v868_v45 = vpop.permute.xlu0 %867 }
 0x30f   : > { %v872_v46 = vsel %vm356_vm5, %v868_v45, 0  ;;  %v865_v47 = vsel %vm345_vm6, %v860_v44, 0 }
 0x310   : > { %970 = vmatpush.bf16.msrb.mxu3 %v872_v46 }
 0x314   : > { %971 = vmatpush.bf16.msrb.mxu3 %v865_v47 }
 0x316   : > { %v830_v48 = vpop.permute.xlu2 %829  ;;  %v838_v49 = vpop.permute.xlu0 %837 }
 0x31e   : > { %v840_v50 = vpop.permute.xlu1 %839  ;;  %v848_v51 = vpop.permute.xlu2 %847 }
 0x31f   : > { %2251 = vmatpush.bf16.msk.msrb.mxu1 %vm2692_vm2, %v840_v50  ;;  %v850_v52 = vpop.permute.xlu0 %849  ;;  %v852_v59 = vsel %vm334_vm9, %v848_v51, 0 }
 0x320   : > { %v855_v57 = vsel %vm334_vm9, %v850_v52, 0  ;;  %v1020_v52 = vunpack.c.h.bf16 %v793_v36 }
 0x323   : > { %2253 = vmatpush.bf16.msk.msrb.mxu1 %vm2692_vm2, %v838_v49 }
 0x326   : > { %v880_v53 = vpop.permute.xlu2 %879  ;;  %v858_v54 = vpop.permute.xlu1 %857 }
 0x327   : > { %v885_v55 = vsel %vm367_vm11, %v880_v53, 0  ;;  %2255 = vmatpush.bf16.msk.msrb.mxu1 %vm2700_vm4, %v830_v48  ;;  %v862_v56 = vsel %vm345_vm6, %v858_v54, 0  ;;  %v820_v60 = vpop.permute.xlu0 %819 }
 0x328   : > { %972 = vmatpush.bf16.msrb.mxu3 %v862_v56  ;;  %994 = vmatpush.bf16.msra.mxu2 %v885_v55 }
 0x32c   : > { %973 = vmatpush.bf16.msrb.mxu3 %v855_v57 }
 0x32e   : > { %v828_v58 = vpop.permute.xlu1 %827  ;;  %v808_v8 = vpop.permute.xlu2 %807 }
 0x32f   : > { %2257 = vmatpush.bf16.msk.msrb.mxu1 %vm2700_vm4, %v828_v58  ;;  %v810_v1 = vpop.permute.xlu0 %809 }
 0x330   : > { %974 = vmatpush.bf16.msrb.mxu3 %v852_v59 }
 0x333   : > { %2259 = vmatpush.bf16.msk.msrb.mxu1 %vm2717_vm8, %v820_v60 }
 0x334   : > { %975 = vmatpush.bf16.msrb.mxu3 %v2531_v37 }
 0x336   : > { %v818_v63 = vpop.permute.xlu1 %817  ;;  %v897_v27 = vpop.permute.xlu2 %896 }
 0x337   : > { %2261 = vmatpush.bf16.msk.msrb.mxu1 %vm2717_vm8, %v818_v63  ;;  %v907_v24 = vpop.permute.xlu0 %906 }
 0x338   : > { %976 = vmatpush.bf16.msrb.mxu3 %v2914_v30 }
 0x33b   : > { %2263 = vmatpush.bf16.msk.msrb.mxu1 %vm2734_vm12, %v810_v1  ;;  %977 = vmatmul.bf16.vlgmr.msrb.gmra.mxu3 %v2233_v0 }
 0x33e   : > { %v878_v9 = vpop.permute.xlu1 %877 }
 0x33f   : > { %v882_v12 = vsel %vm367_vm11, %v878_v9, 0  ;;  %2265 = vmatpush.bf16.msk.msrb.mxu1 %vm2734_vm12, %v808_v8  ;;  %v902_v33 = vpop.permute.xlu0 %901 }
 0x340   : > { %995 = vmatpush.bf16.msra.mxu2 %v882_v12 }
 0x342   : > { %958 = vmatmul.bf16.vlgmr.msrb.gmra.mxu1 %v2229_v10 }
 0x343   : > { %2266 = vmatmul.msk.bf16.vlgmr.msra.gmra.mxu2 %vm430_vm13, %v2237_v13 }
 0x346   : > { %v912_v59 = vpop.permute.xlu1 %911 }
 0x34b   : > { %982 = vmatmul.bf16.gmra.mxu3 %v2245_v16 }
 0x352   : > { %963 = vmatmul.bf16.gmra.mxu1 %v2241_v21  ;;  %v2287_v21 = vld [vmem:[%s3495_s3 + $0x78] sm:$0xff] }
 0x353   : > { %2267 = vmatmul.msk.bf16.gmra.mxu2 %vm430_vm13, %v2249_v22  ;;  %v2285_v22 = vld [vmem:[%s3495_s3 + $0x68] sm:$0xff] }
 0x3be   : > { %v978_v25 = vpop.f32.mrf.mxu3 }
 0x3bf   : > { %v959_v26 = vpop.f32.mrf.mxu1 }
 0x3c0   : > { %v960_v28 = vadd.f32 %v959_v26, %v897_v27 }
 0x3c2   : > { %v979_v29 = vadd.f32 %v978_v25, %v960_v28 }
 0x3c6   : > { %v997_v30 = vpop.f32.mrf.mxu2  ;;  %v980_v35 = vpop.f32.mrf.mxu3 }
 0x3c7   : > { %v998_v31 = vadd.f32 %v997_v30, %v979_v29  ;;  %v961_v32 = vpop.f32.mrf.mxu1 }
 0x3c8   : > { %v962_v38 = vadd.f32 %v961_v32, %v902_v33 }
 0x3c9   : > { %vm1007_vm1 = vcmp.gt.f32.partialorder %v998_v31, 0.0  ;;  %v1011_v37 = vmul.f32 0.2, %v998_v31 }
 0x3ca   : > { %v981_v42 = vadd.f32 %v980_v35, %v962_v38 }
 0x3cb   : > { %v1015_v39 = vsel %vm1007_vm1, %v998_v31, %v1011_v37 }
 0x3cc   : > { %v1023_v41 = vmul.f32 %v2787_v2, %v1015_v39 }
 0x3ce   : > { %v1027_v43 = vadd.f32 %v1023_v41, %v1019_v40  ;;  %v999_v44 = vpop.f32.mrf.mxu2  ;;  %v983_v50 = vpop.f32.mrf.mxu3 }
 0x3cf   : > { %v1000_v45 = vadd.f32 %v999_v44, %v981_v42  ;;  %v964_v46 = vpop.f32.mrf.mxu1 }
 0x3d0   : > { %v1031_v47 = vpack.c.bf16 %v1027_v43, %v1027_v43  ;;  %v965_v49 = vadd.f32 %v964_v46, %v907_v24  ;;  %v2284_v24 = vld [vmem:[%s3495_s3 + $0x60] sm:$0xff] }
 0x3d1   : > { %vm1008_vm3 = vcmp.gt.f32.partialorder %v1000_v45, 0.0  ;;  %v1012_v48 = vmul.f32 0.2, %v1000_v45 }
 0x3d2   : > { %1035 = vst.msk [vmem:[#allocation2] sm:$0xf] %vm257_vm0, %v1031_v47  ;;  %v984_v54 = vadd.f32 %v983_v50, %v965_v49  ;;  %v2292_v49 = vld [vmem:[%s3494_s2 + $0x9c] sm:$0xf0]  ;;  %v2298_v50 = vld [vmem:[%s3494_s2 + $0x98] sm:$0xf] }
 0x3d3   : > { %v1016_v51 = vsel %vm1008_vm3, %v1000_v45, %v1012_v48  ;;  %v2532_v48 = vld [vmem:[%s3494_s2 + $0x94] sm:$0xf] }
 0x3d4   : > { %v1024_v53 = vmul.f32 %v2787_v2, %v1016_v51  ;;  %v2534_v51 = vld [vmem:[%s3494_s2 + $0xa0] sm:$0xf0] }
 0x3d6   : > { %v1028_v55 = vadd.f32 %v1024_v53, %v1020_v52  ;;  %v1002_v56 = vpop.f32.mrf.mxu2  ;;  %v985_v1 = vpop.f32.mrf.mxu3  ;;  %v2295_v53 = vor.u32 %v2532_v48, %v2292_v49 }
 0x3d7   : > { %v1003_v57 = vadd.f32 %v1002_v56, %v984_v54  ;;  %v966_v58 = vpop.f32.mrf.mxu1  ;;  %v2290_v54 = vld [vmem:[%s3494_s2 + $0x90] sm:$0xf]  ;;  %v2299_v56 = vor.u32 %v2534_v51, %v2298_v50 }
 0x3d8   : > { %v1032_v60 = vpack.c.bf16 %v1028_v55, %v1028_v55  ;;  %v967_v63 = vadd.f32 %v966_v58, %v912_v59  ;;  %v2533_v55 = vld [vmem:[%s3494_s2 + $0x98] sm:$0xf0]  ;;  %v2535_v59 = vld [vmem:[%s3494_s2 + $0xac] sm:$0xf] }
 0x3d9   : > { %vm1009_vm7 = vcmp.gt.f32.partialorder %v1003_v57, 0.0  ;;  %v1013_v62 = vmul.f32 0.2, %v1003_v57  ;;  %v2291_v58 = vor.u32 %v2533_v55, %v2290_v54 }
 0x3da   : > { %1036 = vst.msk [vmem:[#allocation2 + $0x4] sm:$0xf] %vm257_vm0, %v1032_v60  ;;  %v986_v5 = vadd.f32 %v985_v1, %v967_v63  ;;  %v2304_v60 = vld [vmem:[%s3494_s2 + $0xb4] sm:$0xf0]  ;;  %v2536_v1 = vld [vmem:[%s3494_s2 + $0xb0] sm:$0xf0] }
 0x3db   : > { %v1017_v0 = vsel %vm1009_vm7, %v1003_v57, %v1013_v62  ;;  %v2537_v62 = vld [vmem:[%s3494_s2 + $0xb8] sm:$0xf0]  ;;  %v2307_v63 = vor.u32 %v2535_v59, %v2304_v60 }
 0x3dc   : > { %v1025_v4 = vmul.f32 %v2787_v2, %v1017_v0  ;;  %v2302_v0 = vld [vmem:[%s3494_s2 + $0xa8] sm:$0xf] }
 0x3de   : > { %v1029_v6 = vadd.f32 %v1025_v4, %v1021_v3  ;;  %v1004_v8 = vpop.f32.mrf.mxu2  ;;  %v2311_v3 = vor.u32 %v2537_v62, %v2310_v61  ;;  %v2303_v4 = vor.u32 %v2536_v1, %v2302_v0  ;;  %v2348_v1 = vld [vmem:[%s3495_s3 + $0x90] sm:$0xff] }
 0x3df   : > { %v1005_v9 = vadd.f32 %v1004_v8, %v986_v5 }
 0x3e0   : > { %v1033_v10 = vpack.c.bf16 %v1029_v6, %v1029_v6 }
 0x3e1   : > { %vm1010_vm10 = vcmp.gt.f32.partialorder %v1005_v9, 0.0  ;;  %v1014_v12 = vmul.f32 0.2, %v1005_v9  ;;  %v3023_v13 = vld [vmem:[#allocation2] sm:$0xff] }
 0x3e2   : > { %1037 = vst.msk [vmem:[#allocation2 + $0x8] sm:$0xf] %vm257_vm0, %v1033_v10  ;;  %1112 = vrot.lane.b32.xlu2 %v3023_v13, %s2597_s30  ;;  %1122 = vrot.lane.b32.xlu1 %v3023_v13, %s2596_s29 }
 0x3e3   : > { %v1018_v14 = vsel %vm1010_vm10, %v1005_v9, %v1014_v12  ;;  %1092 = vrot.lane.b32.xlu0 %v3023_v13, %s2594_s27 }
 0x3e4   : > { %v1026_v16 = vmul.f32 %v2787_v2, %v1018_v14 }
 0x3e6   : > { %v1030_v17 = vadd.f32 %v1026_v16, %v1022_v15  ;;  %v1048_v16 = vld [vmem:[#allocation2] sm:$0xff]  }
 0x3e8   : > { %v1034_v18 = vpack.c.bf16 %v1030_v17, %v1030_v17 }
 0x3ea   : > { %1038 = vst.msk [vmem:[#allocation2 + $0xc] sm:$0xf] %vm257_vm0, %v1034_v18 }
 0x3f1   : > { %v2539_v19 = vld [vmem:[#allocation2 + $0x8] sm:$0xff] }
 0x3f2   : > { %1124 = vrot.lane.b32.xlu2 %v2539_v19, %s2596_s29  ;;  %1094 = vrot.lane.b32.xlu1 %v2539_v19, %s2594_s27 }
 0x3f3   : > { %1114 = vrot.lane.b32.xlu0 %v2539_v19, %s2597_s30 }
 0x3fa   : > { %1084 = vrot.lane.b32.xlu2 %v2539_v19, %s2595_s28  ;;  %1082 = vrot.lane.b32.xlu1 %v3023_v13, %s2595_s28 }
 0x3fb   : > { %1074 = vrot.lane.b32.xlu0 %v2539_v19, %s2598_s7 }
 0x402   : > { %1072 = vrot.lane.b32.xlu2 %v3023_v13, %s2598_s7  ;;  %1104 = vrot.lane.b32.xlu1 %v2539_v19, %s2599_s8 }
 0x403   : > { %1102 = vrot.lane.b32.xlu0 %v3023_v13, %s2599_s8 }
 0x40a   : > { %1064 = vrot.lane.b32.xlu2 %v2539_v19, %s2601_s10  ;;  %1134 = vrot.lane.b32.xlu1 %v2539_v19, %s2600_s9 }
 0x40b   : > { %1132 = vrot.lane.b32.xlu0 %v3023_v13, %s2600_s9 }
 0x412   : > { %1161 = vperm.xlu2 %2582, %v2286_v20   ;;  %1062 = vrot.lane.b32.xlu1 %v3023_v13, %s2601_s10 }
 0x413   : > { %1166 = vperm.xlu0 %2583, %v2287_v21  }
 0x41a   : > { %1156 = vperm.xlu2 %2582, %v2285_v22   ;;  %1151 = vperm.xlu1 %2581, %v2284_v24   ;;  %v1274_v22 = vunpack.c.l.bf16 %v1048_v16 }
 0x43c   : > { %v1113_v25 = vpop.permute.xlu2 %1112 }
 0x43d   : > { %v1117_v36 = vsel %vm345_vm6, %v1113_v25, 0 }
 0x44c   : > { %v1125_v26 = vpop.permute.xlu2 %1124 }
 0x44d   : > { %v1130_v27 = vsel %vm356_vm5, %v1125_v26, 0 }
 0x44e   : > { %1224 = vmatpush.bf16.msra.mxu1 %v1130_v27 }
 0x454   : > { %v1123_v28 = vpop.permute.xlu1 %1122  ;;  %v1085_v35 = vpop.permute.xlu2 %1084 }
 0x455   : > { %v1127_v29 = vsel %vm356_vm5, %v1123_v28, 0  ;;  %v1093_v30 = vpop.permute.xlu0 %1092 }
 0x456   : > { %1225 = vmatpush.bf16.msra.mxu1 %v1127_v29 }
 0x45c   : > { %v1073_v39 = vpop.permute.xlu2 %1072 }
 0x464   : > { %v1095_v31 = vpop.permute.xlu1 %1094  ;;  %v1065_v44 = vpop.permute.xlu2 %1064 }
 0x465   : > { %v1115_v32 = vpop.permute.xlu0 %1114  ;;  %2313 = vmatpush.bf16.msk.msra.mxu0 %vm2692_vm2, %v1095_v31 }
 0x466   : > { %v1120_v33 = vsel %vm345_vm6, %v1115_v32, 0 }
 0x467   : > { %1226 = vmatpush.bf16.msra.mxu1 %v1120_v33 }
 0x469   : > { %2315 = vmatpush.bf16.msk.msra.mxu0 %vm2692_vm2, %v1093_v30 }
 0x46b   : > { %1227 = vmatpush.bf16.msra.mxu1 %v1117_v36  ;;  %v1275_v36 = vunpack.c.h.bf16 %v1048_v16 }
 0x46c   : > { %v1083_v37 = vpop.permute.xlu1 %1082  ;;  %v1162_v6 = vpop.permute.xlu2 %1161 }
 0x46d   : > { %v1075_v38 = vpop.permute.xlu0 %1074  ;;  %2317 = vmatpush.bf16.msk.msra.mxu0 %vm2700_vm4, %v1085_v35 }
 0x471   : > { %2319 = vmatpush.bf16.msk.msra.mxu0 %vm2700_vm4, %v1083_v37 }
 0x474   : > { %v1105_v40 = vpop.permute.xlu1 %1104  ;;  %v1157_v18 = vpop.permute.xlu2 %1156 }
 0x475   : > { %v1110_v41 = vsel %vm334_vm9, %v1105_v40, 0  ;;  %v1103_v42 = vpop.permute.xlu0 %1102  ;;  %2321 = vmatpush.bf16.msk.msra.mxu0 %vm2717_vm8, %v1075_v38 }
 0x476   : > { %1228 = vmatpush.bf16.msra.mxu1 %v1110_v41  ;;  %v1107_v43 = vsel %vm334_vm9, %v1103_v42, 0 }
 0x479   : > { %2323 = vmatpush.bf16.msk.msra.mxu0 %vm2717_vm8, %v1073_v39 }
 0x47a   : > { %1229 = vmatpush.bf16.msra.mxu1 %v1107_v43  ;;  %v1050_v43 = vld [vmem:[#allocation2 + $0x8] sm:$0xff]  }
 0x47b   : > { %v1276_v49 = vunpack.c.l.bf16 %v1050_v43  ;;  %v1277_v60 = vunpack.c.h.bf16 %v1050_v43  ;;  %v2364_v43 = vld [vmem:[%s3494_s2 + $0xd8] sm:$0xf] }
 0x47c   : > { %v1135_v45 = vpop.permute.xlu1 %1134 }
 0x47d   : > { %v1140_v46 = vsel %vm367_vm11, %v1135_v45, 0  ;;  %2325 = vmatpush.bf16.msk.msra.mxu0 %vm2734_vm12, %v1065_v44  ;;  %v1133_v47 = vpop.permute.xlu0 %1132 }
 0x47e   : > { %1230 = vmatpush.bf16.msra.mxu1 %v2539_v19  ;;  %1249 = vmatpush.bf16.msra.mxu3 %v1140_v46  ;;  %v1137_v52 = vsel %vm367_vm11, %v1133_v47, 0 }
 0x482   : > { %1231 = vmatpush.bf16.msra.mxu1 %v3023_v13  ;;  %1250 = vmatpush.bf16.msra.mxu3 %v1137_v52 }
 0x484   : > { %v1063_v57 = vpop.permute.xlu1 %1062 }
 0x485   : > { %2327 = vmatpush.bf16.msk.msra.mxu0 %vm2734_vm12, %v1063_v57  ;;  %1232 = vmatmul.bf16.vlgmr.msra.gmra.mxu1 %v2295_v53  ;;  %v1167_v45 = vpop.permute.xlu0 %1166 }
 0x486   : > { %2328 = vmatmul.msk.bf16.vlgmr.msra.gmra.mxu3 %vm430_vm13, %v2299_v56 }
 0x488   : > { %1213 = vmatmul.bf16.vlgmr.msra.gmra.mxu0 %v2291_v58 }
 0x48c   : > { %v1152_v8 = vpop.permute.xlu1 %1151 }
 0x495   : > { %1237 = vmatmul.bf16.gmra.mxu1 %v2307_v63 }
 0x496   : > { %2329 = vmatmul.msk.bf16.gmra.mxu3 %vm430_vm13, %v2311_v3  ;;  %v2347_v3 = vld [vmem:[%s3495_s3 + $0x88] sm:$0xff] }
 0x498   : > { %1218 = vmatmul.bf16.gmra.mxu0 %v2303_v4  ;;  %v2349_v4 = vld [vmem:[%s3495_s3 + $0x98] sm:$0xff] }
 0x502   : > { %v1233_v5 = vpop.f32.mrf.mxu1 }
 0x505   : > { %v1214_v9 = vpop.f32.mrf.mxu0 }
 0x506   : > { %v1215_v10 = vadd.f32 %v1214_v9, %v1152_v8 }
 0x508   : > { %v1234_v12 = vadd.f32 %v1233_v5, %v1215_v10  ;;  %v2346_v5 = vld [vmem:[%s3495_s3 + $0x80] sm:$0xff] }
 0x509   : > { %v1252_v13 = vpop.f32.mrf.mxu3 }
 0x50a   : > { %v1253_v14 = vadd.f32 %v1252_v13, %v1234_v12  ;;  %v1235_v15 = vpop.f32.mrf.mxu1 }
 0x50c   : > { %vm1262_vm14 = vcmp.gt.f32.partialorder %v1253_v14, 0.0  ;;  %v1266_v17 = vmul.f32 0.2, %v1253_v14 }
 0x50d   : > { %v1216_v19 = vpop.f32.mrf.mxu0 }
 0x50e   : > { %v1270_v20 = vsel %vm1262_vm14, %v1253_v14, %v1266_v17  ;;  %v1217_v21 = vadd.f32 %v1216_v19, %v1157_v18 }
 0x50f   : > { %v1278_v24 = vmul.f32 %v2787_v2, %v1270_v20 }
 0x510   : > { %v1236_v25 = vadd.f32 %v1235_v15, %v1217_v21 }
 0x511   : > { %v1282_v26 = vadd.f32 %v1278_v24, %v1274_v22  ;;  %v1254_v27 = vpop.f32.mrf.mxu3 }
 0x512   : > { %v1255_v28 = vadd.f32 %v1254_v27, %v1236_v25  ;;  %v1238_v31 = vpop.f32.mrf.mxu1 }
 0x513   : > { %v1286_v29 = vpack.c.bf16 %v1282_v26, %v1282_v26 }
 0x514   : > { %vm1263_vm15 = vcmp.gt.f32.partialorder %v1255_v28, 0.0  ;;  %v1267_v30 = vmul.f32 0.2, %v1255_v28 }
 0x515   : > { %1290 = vst.msk [vmem:[#allocation2] sm:$0xf] %vm257_vm0, %v1286_v29  ;;  %v1219_v32 = vpop.f32.mrf.mxu0  ;;  %v2541_v29 = vld [vmem:[%s3494_s2 + $0xc8] sm:$0xf0] }
 0x516   : > { %v1271_v33 = vsel %vm1263_vm15, %v1255_v28, %v1267_v30  ;;  %v1220_v35 = vadd.f32 %v1219_v32, %v1162_v6  ;;  %v2352_v28 = vld [vmem:[%s3494_s2 + $0xc0] sm:$0xf] }
 0x517   : > { %v1279_v37 = vmul.f32 %v2787_v2, %v1271_v33  ;;  %v2353_v32 = vor.u32 %v2541_v29, %v2352_v28 }
 0x518   : > { %v1239_v38 = vadd.f32 %v1238_v31, %v1220_v35  ;;  %v2540_v35 = vld [vmem:[%s3494_s2 + $0xc4] sm:$0xf] }
 0x519   : > { %v1283_v39 = vadd.f32 %v1279_v37, %v1275_v36  ;;  %v1257_v40 = vpop.f32.mrf.mxu3  ;;  %v2354_v36 = vld [vmem:[%s3494_s2 + $0xcc] sm:$0xf0]  ;;  %v2360_v37 = vld [vmem:[%s3494_s2 + $0xc8] sm:$0xf] }
 0x51a   : > { %v1258_v41 = vadd.f32 %v1257_v40, %v1239_v38  ;;  %v1240_v51 = vpop.f32.mrf.mxu1  ;;  %v2542_v38 = vld [vmem:[%s3494_s2 + $0xd0] sm:$0xf0] }
 0x51b   : > { %v1287_v42 = vpack.c.bf16 %v1283_v39, %v1283_v39 }
 0x51c   : > { %vm1264_vm1 = vcmp.gt.f32.partialorder %v1258_v41, 0.0  ;;  %v1268_v44 = vmul.f32 0.2, %v1258_v41 }
 0x51d   : > { %1291 = vst.msk [vmem:[#allocation2 + $0x4] sm:$0xf] %vm257_vm0, %v1287_v42  ;;  %v1221_v46 = vpop.f32.mrf.mxu0  ;;  %v2361_v42 = vor.u32 %v2542_v38, %v2360_v37 }
 0x51e   : > { %v1272_v47 = vsel %vm1264_vm1, %v1258_v41, %v1268_v44  ;;  %v1222_v48 = vadd.f32 %v1221_v46, %v1167_v45  ;;  %v2357_v41 = vor.u32 %v2540_v35, %v2354_v36  ;;  %v2544_v44 = vld [vmem:[%s3494_s2 + $0xe0] sm:$0xf0]  ;;  %v2543_v46 = vld [vmem:[%s3494_s2 + $0xdc] sm:$0xf] }
 0x51f   : > { %v1280_v50 = vmul.f32 %v2787_v2, %v1272_v47  ;;  %v3140_v2 = vld [vmem:[%s3493_s1] ss:$0 sm:$0xff]  ;;  %v2365_v45 = vor.u32 %v2544_v44, %v2364_v43  ;;  %v2366_v47 = vld [vmem:[%s3494_s2 + $0xe4] sm:$0xf0] }
 0x520   : > { %v1241_v52 = vadd.f32 %v1240_v51, %v1222_v48  ;;  %v2372_v48 = vld [vmem:[%s3494_s2 + $0xe0] sm:$0xf] }
 0x521   : > { %v1284_v53 = vadd.f32 %v1280_v50, %v1276_v49  ;;  %v1259_v54 = vpop.f32.mrf.mxu3  ;;  %v2545_v49 = vld [vmem:[%s3494_s2 + $0xe8] sm:$0xf0]  ;;  %v2369_v50 = vor.u32 %v2543_v46, %v2366_v47 }
 0x522   : > { %v1260_v55 = vadd.f32 %v1259_v54, %v1241_v52  ;;  %v2373_v51 = vor.u32 %v2545_v49, %v2372_v48  ;;  %v2411_v49 = vld [vmem:[%s3495_s3 + $0xb8] sm:$0xff] }
 0x523   : > { %v1288_v56 = vpack.c.bf16 %v1284_v53, %v1284_v53 }
 0x524   : > { %vm1265_vm3 = vcmp.gt.f32.partialorder %v1260_v55, 0.0  ;;  %v1269_v57 = vmul.f32 0.2, %v1260_v55  ;;  %v3132_v58 = vld [vmem:[#allocation2] sm:$0xff] }
 0x525   : > { %1292 = vst.msk [vmem:[#allocation2 + $0x8] sm:$0xf] %vm257_vm0, %v1288_v56  ;;  %1347 = vrot.lane.b32.xlu1 %v3132_v58, %s2594_s27 }
 0x526   : > { %v1273_v59 = vsel %vm1265_vm3, %v1260_v55, %v1269_v57 }
 0x527   : > { %v1281_v61 = vmul.f32 %v3140_v2, %v1273_v59 }
 0x529   : > { %v1285_v62 = vadd.f32 %v1281_v61, %v1277_v60  ;;  %v1303_v61 = vld [vmem:[#allocation2] sm:$0xff]  }
 0x52b   : > { %v1289_v63 = vpack.c.bf16 %v1285_v62, %v1285_v62 }
 0x52d   : > { %1293 = vst.msk [vmem:[#allocation2 + $0xc] sm:$0xf] %vm257_vm0, %v1289_v63  ;;  %1377 = vrot.lane.b32.xlu1 %v3132_v58, %s2596_s29 }
 0x534   : > { %v3146_v0 = vld [vmem:[#allocation2 + $0x8] sm:$0xff] }
 0x535   : > { %1379 = vrot.lane.b32.xlu2 %v3146_v0, %s2596_s29  ;;  %1349 = vrot.lane.b32.xlu0 %v3146_v0, %s2594_s27 }
 0x536   : > { %1329 = vrot.lane.b32.xlu1 %v3146_v0, %s2598_s7 }
 0x53d   : > { %1339 = vrot.lane.b32.xlu0 %v3146_v0, %s2595_s28  ;;  %1337 = vrot.lane.b32.xlu2 %v3132_v58, %s2595_s28 }
 0x53e   : > { %1359 = vrot.lane.b32.xlu1 %v3146_v0, %s2599_s8 }
 0x545   : > { %1369 = vrot.lane.b32.xlu0 %v3146_v0, %s2597_s30  ;;  %1367 = vrot.lane.b32.xlu2 %v3132_v58, %s2597_s30 }
 0x546   : > { %1317 = vrot.lane.b32.xlu1 %v3132_v58, %s2601_s10 }
 0x54d   : > { %1327 = vrot.lane.b32.xlu0 %v3132_v58, %s2598_s7  ;;  %1319 = vrot.lane.b32.xlu2 %v3146_v0, %s2601_s10 }
 0x54e   : > { %1416 = vperm.xlu1 %2581, %v2348_v1  }
 0x555   : > { %1357 = vrot.lane.b32.xlu0 %v3132_v58, %s2599_s8  ;;  %1389 = vrot.lane.b32.xlu2 %v3146_v0, %s2600_s9 }
 0x556   : > { %1411 = vperm.xlu1 %2581, %v2347_v3   ;;  %v1529_v3 = vunpack.c.l.bf16 %v1303_v61 }
 0x55d   : > { %1387 = vrot.lane.b32.xlu0 %v3132_v58, %s2600_s9  ;;  %1421 = vperm.xlu2 %2582, %v2349_v4  }
 0x565   : > { %1406 = vperm.xlu0 %2583, %v2346_v5  }
 0x58f   : > { %v1380_v6 = vpop.permute.xlu2 %1379 }
 0x590   : > { %v1385_v8 = vsel %vm356_vm5, %v1380_v6, 0 }
 0x591   : > { %1479 = vmatpush.bf16.msrb.mxu0 %v1385_v8 }
 0x597   : > { %v1338_v9 = vpop.permute.xlu2 %1337  ;;  %v1348_v10 = vpop.permute.xlu1 %1347 }
 0x59f   : > { %v1368_v12 = vpop.permute.xlu2 %1367  ;;  %v1378_v13 = vpop.permute.xlu1 %1377 }
 0x5a0   : > { %v1382_v14 = vsel %vm356_vm5, %v1378_v13, 0  ;;  %v1372_v24 = vsel %vm345_vm6, %v1368_v12, 0 }
 0x5a1   : > { %1480 = vmatpush.bf16.msrb.mxu0 %v1382_v14 }
 0x5a7   : > { %v1350_v15 = vpop.permute.xlu0 %1349  ;;  %v1320_v16 = vpop.permute.xlu2 %1319 }
 0x5a8   : > { %2375 = vmatpush.bf16.msk.msrb.mxu2 %vm2692_vm2, %v1350_v15  ;;  %v1330_v20 = vpop.permute.xlu1 %1329 }
 0x5ac   : > { %2377 = vmatpush.bf16.msk.msrb.mxu2 %vm2692_vm2, %v1348_v10 }
 0x5af   : > { %v1340_v17 = vpop.permute.xlu0 %1339  ;;  %v1390_v18 = vpop.permute.xlu2 %1389 }
 0x5b0   : > { %v1395_v19 = vsel %vm367_vm11, %v1390_v18, 0  ;;  %2379 = vmatpush.bf16.msk.msrb.mxu2 %vm2700_vm4, %v1340_v17  ;;  %v1360_v25 = vpop.permute.xlu1 %1359  ;;  %v1530_v17 = vunpack.c.h.bf16 %v1303_v61 }
 0x5b1   : > { %1504 = vmatpush.bf16.msrb.mxu1 %v1395_v19  ;;  %v1365_v27 = vsel %vm334_vm9, %v1360_v25, 0 }
 0x5b4   : > { %2381 = vmatpush.bf16.msk.msrb.mxu2 %vm2700_vm4, %v1338_v9 }
 0x5b7   : > { %v1370_v21 = vpop.permute.xlu0 %1369 }
 0x5b8   : > { %v1375_v22 = vsel %vm345_vm6, %v1370_v21, 0  ;;  %2383 = vmatpush.bf16.msk.msrb.mxu2 %vm2717_vm8, %v1330_v20  ;;  %v1318_v30 = vpop.permute.xlu1 %1317 }
 0x5b9   : > { %1481 = vmatpush.bf16.msrb.mxu0 %v1375_v22 }
 0x5bd   : > { %1482 = vmatpush.bf16.msrb.mxu0 %v1372_v24 }
 0x5bf   : > { %v1328_v26 = vpop.permute.xlu0 %1327 }
 0x5c0   : > { %2385 = vmatpush.bf16.msk.msrb.mxu2 %vm2717_vm8, %v1328_v26  ;;  %v1417_v52 = vpop.permute.xlu1 %1416  ;;  %v1422_v26 = vpop.permute.xlu2 %1421 }
 0x5c1   : > { %1483 = vmatpush.bf16.msrb.mxu0 %v1365_v27  ;;  %v1305_v27 = vld [vmem:[#allocation2 + $0x8] sm:$0xff]  }
 0x5c2   : > { %v1532_v44 = vunpack.c.h.bf16 %v1305_v27 }
 0x5c4   : > { %2387 = vmatpush.bf16.msk.msrb.mxu2 %vm2734_vm12, %v1320_v16 }
 0x5c7   : > { %v1358_v31 = vpop.permute.xlu0 %1357 }
 0x5c8   : > { %v1362_v33 = vsel %vm334_vm9, %v1358_v31, 0  ;;  %2389 = vmatpush.bf16.msk.msrb.mxu2 %vm2734_vm12, %v1318_v30  ;;  %v1412_v60 = vpop.permute.xlu1 %1411 }
 0x5c9   : > { %1484 = vmatpush.bf16.msrb.mxu0 %v1362_v33 }
 0x5cb   : > { %1468 = vmatmul.bf16.vlgmr.msrb.gmra.mxu2 %v2353_v32  ;;  %v1531_v32 = vunpack.c.l.bf16 %v1305_v27  ;;  %v2553_v27 = vld [vmem:[%s3494_s2 + $0x118] sm:$0xf0] }
 0x5cd   : > { %1485 = vmatpush.bf16.msrb.mxu0 %v3146_v0 }
 0x5cf   : > { %v1388_v39 = vpop.permute.xlu0 %1387 }
 0x5d0   : > { %v1392_v40 = vsel %vm367_vm11, %v1388_v39, 0 }
 0x5d1   : > { %1486 = vmatpush.bf16.msrb.mxu0 %v3132_v58  ;;  %1505 = vmatpush.bf16.msrb.mxu1 %v1392_v40 }
 0x5d4   : > { %1487 = vmatmul.bf16.vlgmr.msrb.gmra.mxu0 %v2357_v41  ;;  %2390 = vmatmul.msk.bf16.vlgmr.msrb.gmra.mxu1 %vm430_vm13, %v2361_v42 }
 0x5d7   : > { %v1407_v53 = vpop.permute.xlu0 %1406 }
 0x5db   : > { %1473 = vmatmul.bf16.gmra.mxu2 %v2365_v45 }
 0x5e4   : > { %1492 = vmatmul.bf16.gmra.mxu0 %v2369_v50  ;;  %2391 = vmatmul.msk.bf16.gmra.mxu1 %vm430_vm13, %v2373_v51  ;;  %v2410_v50 = vld [vmem:[%s3495_s3 + $0xb0] sm:$0xff]  ;;  %v2408_v51 = vld [vmem:[%s3495_s3 + $0xa0] sm:$0xff] }
 0x64e   : > { %v1469_v54 = vpop.f32.mrf.mxu2 }
 0x64f   : > { %v1470_v55 = vadd.f32 %v1469_v54, %v1407_v53 }
 0x651   : > { %v1488_v56 = vpop.f32.mrf.mxu0  ;;  %v1507_v57 = vpop.f32.mrf.mxu1 }
 0x652   : > { %v1489_v58 = vadd.f32 %v1488_v56, %v1470_v55 }
 0x654   : > { %v1508_v59 = vadd.f32 %v1507_v57, %v1489_v58 }
 0x656   : > { %vm1517_vm7 = vcmp.gt.f32.partialorder %v1508_v59, 0.0  ;;  %v1521_v62 = vmul.f32 0.2, %v1508_v59  ;;  %v1471_v63 = vpop.f32.mrf.mxu2 }
 0x657   : > { %v1472_v0 = vadd.f32 %v1471_v63, %v1412_v60 }
 0x658   : > { %v1525_v1 = vsel %vm1517_vm7, %v1508_v59, %v1521_v62 }
 0x659   : > { %v1533_v4 = vmul.f32 %v3140_v2, %v1525_v1  ;;  %v1490_v5 = vpop.f32.mrf.mxu0  ;;  %v1509_v6 = vpop.f32.mrf.mxu1 }
 0x65a   : > { %v1491_v8 = vadd.f32 %v1490_v5, %v1472_v0 }
 0x65b   : > { %v1537_v9 = vadd.f32 %v1533_v4, %v1529_v3 }
 0x65c   : > { %v1510_v10 = vadd.f32 %v1509_v6, %v1491_v8 }
 0x65d   : > { %v1541_v12 = vpack.c.bf16 %v1537_v9, %v1537_v9 }
 0x65e   : > { %vm1518_vm10 = vcmp.gt.f32.partialorder %v1510_v10, 0.0  ;;  %v1522_v13 = vmul.f32 0.2, %v1510_v10  ;;  %v1474_v14 = vpop.f32.mrf.mxu2 }
 0x65f   : > { %1545 = vst.msk [vmem:[#allocation2] sm:$0xf] %vm257_vm0, %v1541_v12  ;;  %v1475_v15 = vadd.f32 %v1474_v14, %v1417_v52  ;;  %v2409_v52 = vld [vmem:[%s3495_s3 + $0xa8] sm:$0xff]  ;;  %v2422_v14 = vld [vmem:[%s3494_s2 + $0xf8] sm:$0xf] }
 0x660   : > { %v1526_v16 = vsel %vm1518_vm10, %v1510_v10, %v1522_v13 }
 0x661   : > { %v1534_v18 = vmul.f32 %v3140_v2, %v1526_v16  ;;  %v1493_v19 = vpop.f32.mrf.mxu0  ;;  %v1512_v20 = vpop.f32.mrf.mxu1  ;;  %v2414_v16 = vld [vmem:[%s3494_s2 + $0xf0] sm:$0xf] }
 0x662   : > { %v1494_v21 = vadd.f32 %v1493_v19, %v1475_v15  ;;  %v2550_v15 = vld [vmem:[%s3494_s2 + $0x100] sm:$0xf0]  ;;  %v2548_v19 = vld [vmem:[%s3494_s2 + $0xf4] sm:$0xf] }
 0x663   : > { %v1538_v22 = vadd.f32 %v1534_v18, %v1530_v17  ;;  %v2549_v17 = vld [vmem:[%s3494_s2 + $0xf8] sm:$0xf0] }
 0x664   : > { %v1513_v24 = vadd.f32 %v1512_v20, %v1494_v21  ;;  %v2416_v20 = vld [vmem:[%s3494_s2 + $0xfc] sm:$0xf0]  ;;  %v2423_v21 = vor.u32 %v2550_v15, %v2422_v14 }
 0x665   : > { %v1542_v25 = vpack.c.bf16 %v1538_v22, %v1538_v22 }
 0x666   : > { %vm1519_vm14 = vcmp.gt.f32.partialorder %v1513_v24, 0.0  ;;  %v1523_v28 = vmul.f32 0.2, %v1513_v24  ;;  %v1476_v29 = vpop.f32.mrf.mxu2 }
 0x667   : > { %1546 = vst.msk [vmem:[#allocation2 + $0x4] sm:$0xf] %vm257_vm0, %v1542_v25  ;;  %v1477_v30 = vadd.f32 %v1476_v29, %v1422_v26  ;;  %v2419_v25 = vor.u32 %v2548_v19, %v2416_v20  ;;  %v2434_v26 = vld [vmem:[%s3494_s2 + $0x110] sm:$0xf]  ;;  %v2552_v29 = vld [vmem:[%s3494_s2 + $0x110] sm:$0xf0] }
 0x668   : > { %v1527_v31 = vsel %vm1519_vm14, %v1513_v24, %v1523_v28  ;;  %v2415_v24 = vor.u32 %v2549_v17, %v2414_v16  ;;  %v2426_v28 = vld [vmem:[%s3494_s2 + $0x108] sm:$0xf] }
 0x669   : > { %v1535_v33 = vmul.f32 %v3140_v2, %v1527_v31  ;;  %v1495_v35 = vpop.f32.mrf.mxu0  ;;  %v1514_v38 = vpop.f32.mrf.mxu1  ;;  %v2428_v31 = vld [vmem:[%s3494_s2 + $0x114] sm:$0xf0] }
 0x66a   : > { %v1496_v36 = vadd.f32 %v1495_v35, %v1477_v30  ;;  %v2551_v30 = vld [vmem:[%s3494_s2 + $0x10c] sm:$0xf] }
 0x66b   : > { %v1539_v37 = vadd.f32 %v1535_v33, %v1531_v32  ;;  %v2435_v32 = vor.u32 %v2553_v27, %v2434_v26  ;;  %v2427_v33 = vor.u32 %v2552_v29, %v2426_v28  ;;  %v2431_v35 = vor.u32 %v2551_v30, %v2428_v31 }
 0x66c   : > { %v1515_v39 = vadd.f32 %v1514_v38, %v1496_v36 }
 0x66d   : > { %v1543_v40 = vpack.c.bf16 %v1539_v37, %v1539_v37 }
 0x66e   : > { %vm1520_vm15 = vcmp.gt.f32.partialorder %v1515_v39, 0.0  ;;  %v1524_v41 = vmul.f32 0.2, %v1515_v39  ;;  %v3257_v42 = vld [vmem:[#allocation2] sm:$0xff] }
 0x66f   : > { %1547 = vst.msk [vmem:[#allocation2 + $0x8] sm:$0xf] %vm257_vm0, %v1543_v40  ;;  %1632 = vrot.lane.b32.xlu2 %v3257_v42, %s2596_s29  ;;  %1602 = vrot.lane.b32.xlu1 %v3257_v42, %s2594_s27 }
 0x670   : > { %v1528_v43 = vsel %vm1520_vm15, %v1515_v39, %v1524_v41 }
 0x671   : > { %v1536_v45 = vmul.f32 %v3140_v2, %v1528_v43 }
 0x673   : > { %v1540_v46 = vadd.f32 %v1536_v45, %v1532_v44  ;;  %v1558_v45 = vld [vmem:[#allocation2] sm:$0xff]  }
 0x675   : > { %v1544_v47 = vpack.c.bf16 %v1540_v46, %v1540_v46 }
 0x677   : > { %1548 = vst.msk [vmem:[#allocation2 + $0xc] sm:$0xf] %vm257_vm0, %v1544_v47 }
 0x67e   : > { %v3266_v48 = vld [vmem:[#allocation2 + $0x8] sm:$0xff] }
 0x67f   : > { %1634 = vrot.lane.b32.xlu0 %v3266_v48, %s2596_s29  ;;  %1604 = vrot.lane.b32.xlu2 %v3266_v48, %s2594_s27 }
 0x680   : > { %1624 = vrot.lane.b32.xlu1 %v3266_v48, %s2597_s30 }
 0x687   : > { %1594 = vrot.lane.b32.xlu0 %v3266_v48, %s2595_s28  ;;  %1592 = vrot.lane.b32.xlu2 %v3257_v42, %s2595_s28 }
 0x688   : > { %1584 = vrot.lane.b32.xlu1 %v3266_v48, %s2598_s7 }
 0x68f   : > { %1622 = vrot.lane.b32.xlu0 %v3257_v42, %s2597_s30  ;;  %1614 = vrot.lane.b32.xlu2 %v3266_v48, %s2599_s8 }
 0x690   : > { %1612 = vrot.lane.b32.xlu1 %v3257_v42, %s2599_s8 }
 0x697   : > { %1582 = vrot.lane.b32.xlu0 %v3257_v42, %s2598_s7  ;;  %1574 = vrot.lane.b32.xlu2 %v3266_v48, %s2601_s10 }
 0x698   : > { %1644 = vrot.lane.b32.xlu1 %v3266_v48, %s2600_s9 }
 0x69f   : > { %1572 = vrot.lane.b32.xlu0 %v3257_v42, %s2601_s10  ;;  %1642 = vrot.lane.b32.xlu2 %v3257_v42, %s2600_s9 }
 0x6a0   : > { %1676 = vperm.xlu1 %2581, %v2411_v49  }
 0x6a7   : > { %1671 = vperm.xlu0 %2583, %v2410_v50   ;;  %1661 = vperm.xlu2 %2582, %v2408_v51  }
 0x6af   : > { %1666 = vperm.xlu0 %2583, %v2409_v52   ;;  %v1784_v52 = vunpack.c.l.bf16 %v1558_v45 }
 0x6c9   : > { %v1633_v53 = vpop.permute.xlu2 %1632 }
 0x6ca   : > { %v1637_v60 = vsel %vm356_vm5, %v1633_v53, 0 }
 0x6d9   : > { %v1605_v54 = vpop.permute.xlu2 %1604 }
 0x6da   : > { %2437 = vmatpush.bf16.msk.msrb.mxu3 %vm2692_vm2, %v1605_v54 }
 0x6e1   : > { %v1603_v55 = vpop.permute.xlu1 %1602  ;;  %v1593_v56 = vpop.permute.xlu2 %1592 }
 0x6e2   : > { %2439 = vmatpush.bf16.msk.msrb.mxu3 %vm2692_vm2, %v1603_v55 }
 0x6e9   : > { %v1615_v61 = vpop.permute.xlu2 %1614 }
 0x6ea   : > { %v1620_v6 = vsel %vm334_vm9, %v1615_v61, 0 }
 0x6f1   : > { %v1635_v57 = vpop.permute.xlu0 %1634  ;;  %v1575_v3 = vpop.permute.xlu2 %1574 }
 0x6f2   : > { %v1640_v58 = vsel %vm356_vm5, %v1635_v57, 0  ;;  %v1625_v59 = vpop.permute.xlu1 %1624 }
 0x6f3   : > { %1734 = vmatpush.bf16.msra.mxu2 %v1640_v58  ;;  %v1630_v63 = vsel %vm345_vm6, %v1625_v59, 0 }
 0x6f7   : > { %1735 = vmatpush.bf16.msra.mxu2 %v1637_v60 }
 0x6f9   : > { %v1595_v62 = vpop.permute.xlu0 %1594  ;;  %v1643_v13 = vpop.permute.xlu2 %1642 }
 0x6fa   : > { %v1585_v0 = vpop.permute.xlu1 %1584  ;;  %2441 = vmatpush.bf16.msk.msrb.mxu3 %vm2700_vm4, %v1595_v62  ;;  %v1647_v18 = vsel %vm367_vm11, %v1643_v13, 0 }
 0x6fb   : > { %1736 = vmatpush.bf16.msra.mxu2 %v1630_v63  ;;  %v1785_v63 = vunpack.c.h.bf16 %v1558_v45 }
 0x6fe   : > { %2443 = vmatpush.bf16.msk.msrb.mxu3 %vm2700_vm4, %v1593_v56 }
 0x701   : > { %v1623_v1 = vpop.permute.xlu0 %1622  ;;  %v1662_v38 = vpop.permute.xlu2 %1661 }
 0x702   : > { %v1627_v4 = vsel %vm345_vm6, %v1623_v1, 0  ;;  %v1613_v5 = vpop.permute.xlu1 %1612  ;;  %2445 = vmatpush.bf16.msk.msrb.mxu3 %vm2717_vm8, %v1585_v0 }
 0x703   : > { %1737 = vmatpush.bf16.msra.mxu2 %v1627_v4  ;;  %v1617_v9 = vsel %vm334_vm9, %v1613_v5, 0 }
 0x707   : > { %1738 = vmatpush.bf16.msra.mxu2 %v1620_v6 }
 0x709   : > { %v1583_v8 = vpop.permute.xlu0 %1582 }
 0x70a   : > { %v1645_v10 = vpop.permute.xlu1 %1644  ;;  %2447 = vmatpush.bf16.msk.msrb.mxu3 %vm2717_vm8, %v1583_v8  ;;  %v1560_v8 = vld [vmem:[#allocation2 + $0x8] sm:$0xff]  }
 0x70b   : > { %v1650_v12 = vsel %vm367_vm11, %v1645_v10, 0  ;;  %1739 = vmatpush.bf16.msra.mxu2 %v1617_v9  ;;  %v1786_v16 = vunpack.c.l.bf16 %v1560_v8  ;;  %v1787_v27 = vunpack.c.h.bf16 %v1560_v8 }
 0x70c   : > { %1759 = vmatpush.bf16.msra.mxu0 %v1650_v12 }
 0x70e   : > { %2449 = vmatpush.bf16.msk.msrb.mxu3 %vm2734_vm12, %v1575_v3 }
 0x70f   : > { %1740 = vmatpush.bf16.msra.mxu2 %v3266_v48 }
 0x710   : > { %1760 = vmatpush.bf16.msra.mxu0 %v1647_v18 }
 0x711   : > { %v1573_v22 = vpop.permute.xlu0 %1572 }
 0x712   : > { %2451 = vmatpush.bf16.msk.msrb.mxu3 %vm2734_vm12, %v1573_v22  ;;  %v1677_v10 = vpop.permute.xlu1 %1676 }
 0x713   : > { %1741 = vmatpush.bf16.msra.mxu2 %v3257_v42  ;;  %2452 = vmatmul.msk.bf16.vlgmr.msra.gmra.mxu0 %vm430_vm13, %v2423_v21 }
 0x715   : > { %1723 = vmatmul.bf16.vlgmr.msrb.gmra.mxu3 %v2415_v24 }
 0x716   : > { %1742 = vmatmul.bf16.vlgmr.msra.gmra.mxu2 %v2419_v25 }
 0x719   : > { %v1672_v36 = vpop.permute.xlu0 %1671 }
 0x721   : > { %v1667_v44 = vpop.permute.xlu0 %1666 }
 0x723   : > { %2453 = vmatmul.msk.bf16.gmra.mxu0 %vm430_vm13, %v2435_v32  ;;  %v1911_v32 = vld [vmem:[%s3497_s5 + $0x18] sm:$0xff] }
 0x725   : > { %1728 = vmatmul.bf16.gmra.mxu3 %v2427_v33  ;;  %v1909_v33 = vld [vmem:[%s3497_s5 + $0x8] sm:$0xff] }
 0x726   : > { %1747 = vmatmul.bf16.gmra.mxu2 %v2431_v35  ;;  %v1910_v35 = vld [vmem:[%s3497_s5 + $0x10] sm:$0xff] }
 0x790   : > { %v1762_v37 = vpop.f32.mrf.mxu0 }
 0x798   : > { %v1724_v39 = vpop.f32.mrf.mxu3  ;;  %v1764_v47 = vpop.f32.mrf.mxu0 }
 0x799   : > { %v1725_v40 = vadd.f32 %v1724_v39, %v1662_v38  ;;  %v1743_v41 = vpop.f32.mrf.mxu2 }
 0x79b   : > { %v1744_v42 = vadd.f32 %v1743_v41, %v1725_v40 }
 0x79d   : > { %v1763_v43 = vadd.f32 %v1762_v37, %v1744_v42 }
 0x79f   : > { %vm1772_vm1 = vcmp.gt.f32.partialorder %v1763_v43, 0.0  ;;  %v1776_v46 = vmul.f32 0.2, %v1763_v43 }
 0x7a0   : > { %v1726_v48 = vpop.f32.mrf.mxu3  ;;  %v1767_v1 = vpop.f32.mrf.mxu0 }
 0x7a1   : > { %v1780_v49 = vsel %vm1772_vm1, %v1763_v43, %v1776_v46  ;;  %v1727_v50 = vadd.f32 %v1726_v48, %v1667_v44  ;;  %v1745_v51 = vpop.f32.mrf.mxu2 }
 0x7a2   : > { %v1788_v53 = vmul.f32 %v3140_v2, %v1780_v49 }
 0x7a3   : > { %v1746_v54 = vadd.f32 %v1745_v51, %v1727_v50 }
 0x7a4   : > { %v1792_v55 = vadd.f32 %v1788_v53, %v1784_v52  ;;  %v2556_v53 = vld [vmem:[%s3496_s4 + $0x4] sm:$0xf] }
 0x7a5   : > { %v1765_v56 = vadd.f32 %v1764_v47, %v1746_v54 }
 0x7a6   : > { %v1796_v57 = vpack.c.bf16 %v1792_v55, %v1792_v55 }
 0x7a7   : > { %vm1773_vm3 = vcmp.gt.f32.partialorder %v1765_v56, 0.0  ;;  %v1777_v58 = vmul.f32 0.2, %v1765_v56 }
 0x7a8   : > { %1800 = vst.msk [vmem:[#allocation2] sm:$0xf] %vm257_vm0, %v1796_v57  ;;  %v1729_v59 = vpop.f32.mrf.mxu3  ;;  %v1769_v20 = vpop.f32.mrf.mxu0  ;;  %v2469_v57 = vor.u32 %v2556_v53, %v2466_v11 }
 0x7a9   : > { %v1781_v60 = vsel %vm1773_vm3, %v1765_v56, %v1777_v58  ;;  %v1730_v61 = vadd.f32 %v1729_v59, %v1672_v36  ;;  %v1748_v62 = vpop.f32.mrf.mxu2  ;;  %v2558_v59 = vld [vmem:[%s3496_s4 + $0x10] sm:$0xf0] }
 0x7aa   : > { %v1789_v0 = vmul.f32 %v3140_v2, %v1781_v60 }
 0x7ab   : > { %v1749_v3 = vadd.f32 %v1748_v62, %v1730_v61  ;;  %v2473_v61 = vor.u32 %v2558_v59, %v2472_v23  ;;  %v2464_v62 = vld [vmem:[%s3496_s4] sm:$0xf] }
 0x7ac   : > { %v1793_v4 = vadd.f32 %v1789_v0, %v1785_v63  ;;  %v2557_v63 = vld [vmem:[%s3496_s4 + $0x8] sm:$0xf0] }
 0x7ad   : > { %v1768_v5 = vadd.f32 %v1767_v1, %v1749_v3  ;;  %v2465_v1 = vor.u32 %v2557_v63, %v2464_v62  ;;  %v2559_v3 = vld [vmem:[%s3496_s4 + $0x1c] sm:$0xf] }
 0x7ae   : > { %v1797_v6 = vpack.c.bf16 %v1793_v4, %v1793_v4  ;;  %v2478_v4 = vld [vmem:[%s3496_s4 + $0x24] sm:$0xf0] }
 0x7af   : > { %vm1774_vm7 = vcmp.gt.f32.partialorder %v1768_v5, 0.0  ;;  %v1778_v9 = vmul.f32 0.2, %v1768_v5 }
 0x7b0   : > { %1801 = vst.msk [vmem:[#allocation2 + $0x4] sm:$0xf] %vm257_vm0, %v1797_v6  ;;  %v1731_v12 = vpop.f32.mrf.mxu3  ;;  %v2484_v6 = vld [vmem:[%s3496_s4 + $0x20] sm:$0xf] }
 0x7b1   : > { %v1782_v13 = vsel %vm1774_vm7, %v1768_v5, %v1778_v9  ;;  %v1732_v14 = vadd.f32 %v1731_v12, %v1677_v10  ;;  %v1750_v15 = vpop.f32.mrf.mxu2  ;;  %v2481_v5 = vor.u32 %v2559_v3, %v2478_v4  ;;  %v2485_v8 = vor.u32 %v2561_v34, %v2484_v6  ;;  %v2476_v9 = vld [vmem:[%s3496_s4 + $0x18] sm:$0xf]  ;;  %v2560_v10 = vld [vmem:[%s3496_s4 + $0x20] sm:$0xf0] }
 0x7b2   : > { %v1790_v17 = vmul.f32 %v3140_v2, %v1782_v13  ;;  %v2477_v12 = vor.u32 %v2560_v10, %v2476_v9 }
 0x7b3   : > { %v1751_v18 = vadd.f32 %v1750_v15, %v1732_v14 }
 0x7b4   : > { %v1794_v19 = vadd.f32 %v1790_v17, %v1786_v16 }
 0x7b5   : > { %v1770_v21 = vadd.f32 %v1769_v20, %v1751_v18 }
 0x7b6   : > { %v1798_v22 = vpack.c.bf16 %v1794_v19, %v1794_v19 }
 0x7b7   : > { %vm1775_vm10 = vcmp.gt.f32.partialorder %v1770_v21, 0.0  ;;  %v1779_v24 = vmul.f32 0.2, %v1770_v21  ;;  %v3377_v25 = vld [vmem:[#allocation2] sm:$0xff] }
 0x7b8   : > { %1802 = vst.msk [vmem:[#allocation2 + $0x8] sm:$0xf] %vm257_vm0, %v1798_v22  ;;  %1886 = vrot.lane.b32.xlu2 %v3377_v25, %s2596_s29 }
 0x7b9   : > { %v1783_v26 = vsel %vm1775_vm10, %v1770_v21, %v1779_v24 }
 0x7ba   : > { %v1791_v28 = vmul.f32 %v3140_v2, %v1783_v26  ;;  %v1908_v2 = vld [vmem:[%s3497_s5] sm:$0xff] }
 0x7bc   : > { %v1795_v29 = vadd.f32 %v1791_v28, %v1787_v27 }
 0x7be   : > { %v1799_v30 = vpack.c.bf16 %v1795_v29, %v1795_v29 }
 0x7c0   : > { %1803 = vst.msk [vmem:[#allocation2 + $0xc] sm:$0xf] %vm257_vm0, %v1799_v30  ;;  %1856 = vrot.lane.b32.xlu2 %v3377_v25, %s2594_s27  ;;  %vm2025_vm0 = vcmask 818176  }
 0x7c7   : > { %v2563_v31 = vld [vmem:[#allocation2 + $0x8] sm:$0xff] }
 0x7c8   : > { %1858 = vrot.lane.b32.xlu0 %v2563_v31, %s2594_s27  ;;  %1888 = vrot.lane.b32.xlu1 %v2563_v31, %s2596_s29 }
 0x7c9   : > { %1868 = vrot.lane.b32.xlu2 %v2563_v31, %s2599_s8 }
 0x7d0   : > { %1878 = vrot.lane.b32.xlu1 %v2563_v31, %s2597_s30  ;;  %1876 = vrot.lane.b32.xlu0 %v3377_v25, %s2597_s30 }
 0x7d1   : > { %1838 = vrot.lane.b32.xlu2 %v2563_v31, %s2598_s7 }
 0x7d8   : > { %1848 = vrot.lane.b32.xlu1 %v2563_v31, %s2595_s28  ;;  %1846 = vrot.lane.b32.xlu0 %v3377_v25, %s2595_s28 }
 0x7d9   : > { %1828 = vrot.lane.b32.xlu2 %v2563_v31, %s2601_s10 }
 0x7e0   : > { %1866 = vrot.lane.b32.xlu1 %v3377_v25, %s2599_s8  ;;  %1836 = vrot.lane.b32.xlu0 %v3377_v25, %s2598_s7 }
 0x7e1   : > { %1914 = vperm.xlu2 %2582, %v1908_v2  }
 0x7e8   : > { %1898 = vrot.lane.b32.xlu1 %v2563_v31, %s2600_s9  ;;  %1896 = vrot.lane.b32.xlu0 %v3377_v25, %s2600_s9 }
 0x7e9   : > { %1929 = vperm.xlu2 %2582, %v1911_v32  }
 0x7f0   : > { %1826 = vrot.lane.b32.xlu1 %v3377_v25, %s2601_s10  ;;  %1919 = vperm.xlu0 %2583, %v1909_v33  }
 0x7f8   : > { %1924 = vperm.xlu1 %2581, %v1910_v35  }
 0x812   : > { %v1887_v36 = vpop.permute.xlu2 %1886 }
 0x813   : > { %v1891_v41 = vsel %vm356_vm5, %v1887_v36, 0 }
 0x81a   : > { %v1857_v40 = vpop.permute.xlu2 %1856 }
 0x823   : > { %v1869_v45 = vpop.permute.xlu2 %1868 }
 0x824   : > { %v1874_v49 = vsel %vm334_vm9, %v1869_v45, 0 }
 0x82b   : > { %v1839_v7 = vpop.permute.xlu2 %1838 }
 0x833   : > { %v1829_v54 = vpop.permute.xlu2 %1828 }
 0x83a   : > { %v1859_v37 = vpop.permute.xlu0 %1858  ;;  %v1889_v38 = vpop.permute.xlu1 %1888 }
 0x83b   : > { %v1894_v39 = vsel %vm356_vm5, %v1889_v38, 0  ;;  %2487 = vmatpush.bf16.msk.msra.mxu1 %vm2692_vm2, %v1859_v37  ;;  %v1915_v14 = vpop.permute.xlu2 %1914 }
 0x83c   : > { %1987 = vmatpush.bf16.msra.mxu3 %v1894_v39 }
 0x83f   : > { %2489 = vmatpush.bf16.msk.msra.mxu1 %vm2692_vm2, %v1857_v40 }
 0x840   : > { %1988 = vmatpush.bf16.msra.mxu3 %v1891_v41 }
 0x842   : > { %v1879_v42 = vpop.permute.xlu1 %1878  ;;  %v1877_v43 = vpop.permute.xlu0 %1876 }
 0x843   : > { %v1884_v44 = vsel %vm345_vm6, %v1879_v42, 0  ;;  %v1881_v46 = vsel %vm345_vm6, %v1877_v43, 0  ;;  %v1930_v35 = vpop.permute.xlu2 %1929 }
 0x844   : > { %1989 = vmatpush.bf16.msra.mxu3 %v1884_v44 }
 0x848   : > { %1990 = vmatpush.bf16.msra.mxu3 %v1881_v46 }
 0x84a   : > { %v1849_v47 = vpop.permute.xlu1 %1848  ;;  %v1847_v48 = vpop.permute.xlu0 %1846 }
 0x84b   : > { %2491 = vmatpush.bf16.msk.msra.mxu1 %vm2700_vm4, %v1849_v47 }
 0x84c   : > { %1991 = vmatpush.bf16.msra.mxu3 %v1874_v49 }
 0x84f   : > { %2493 = vmatpush.bf16.msk.msra.mxu1 %vm2700_vm4, %v1847_v48 }
 0x852   : > { %v1867_v50 = vpop.permute.xlu1 %1866  ;;  %v1837_v51 = vpop.permute.xlu0 %1836 }
 0x853   : > { %v1871_v52 = vsel %vm334_vm9, %v1867_v50, 0  ;;  %2495 = vmatpush.bf16.msk.msra.mxu1 %vm2717_vm8, %v1839_v7 }
 0x854   : > { %1992 = vmatpush.bf16.msra.mxu3 %v1871_v52 }
 0x857   : > { %2497 = vmatpush.bf16.msk.msra.mxu1 %vm2717_vm8, %v1837_v51 }
 0x858   : > { %1993 = vmatpush.bf16.msra.mxu3 %v2563_v31 }
 0x85a   : > { %v1899_v55 = vpop.permute.xlu1 %1898  ;;  %v1897_v58 = vpop.permute.xlu0 %1896 }
 0x85b   : > { %v1904_v56 = vsel %vm367_vm11, %v1899_v55, 0  ;;  %2499 = vmatpush.bf16.msk.msra.mxu1 %vm2734_vm12, %v1829_v54  ;;  %v1901_v60 = vsel %vm367_vm11, %v1897_v58, 0 }
 0x85c   : > { %1994 = vmatpush.bf16.msra.mxu3 %v3377_v25  ;;  %2012 = vmatpush.bf16.msrb.mxu2 %v1904_v56 }
 0x85f   : > { %1995 = vmatmul.bf16.vlgmr.msra.gmra.mxu3 %v2469_v57 }
 0x860   : > { %2013 = vmatpush.bf16.msrb.mxu2 %v1901_v60 }
 0x862   : > { %v1827_v0 = vpop.permute.xlu1 %1826  ;;  %v1920_v21 = vpop.permute.xlu0 %1919 }
 0x863   : > { %2501 = vmatpush.bf16.msk.msra.mxu1 %vm2734_vm12, %v1827_v0  ;;  %2502 = vmatmul.msk.bf16.vlgmr.msrb.gmra.mxu2 %vm430_vm13, %v2473_v61 }
 0x866   : > { %1976 = vmatmul.bf16.vlgmr.msra.gmra.mxu1 %v2465_v1 }
 0x86a   : > { %v1925_v28 = vpop.permute.xlu1 %1924 }
 0x86f   : > { %2000 = vmatmul.bf16.gmra.mxu3 %v2481_v5 }
 0x873   : > { %2503 = vmatmul.msk.bf16.gmra.mxu2 %vm430_vm13, %v2485_v8 }
 0x876   : > { %1981 = vmatmul.bf16.gmra.mxu1 %v2477_v12 }
 0x8e2   : > { %v1996_v13 = vpop.f32.mrf.mxu3 }
 0x8e3   : > { %v1977_v15 = vpop.f32.mrf.mxu1 }
 0x8e4   : > { %v1978_v16 = vadd.f32 %v1977_v15, %v1915_v14 }
 0x8e6   : > { %v1997_v17 = vadd.f32 %v1996_v13, %v1978_v16  ;;  %v2015_v18 = vpop.f32.mrf.mxu2 }
 0x8e8   : > { %v2016_v19 = vadd.f32 %v2015_v18, %v1997_v17 }
 0x8ea   : > { %2026 = vst.msk [vmem:[%s251_s16] sm:$0xff] %vm2025_vm0, %v2016_v19  ;;  %v1998_v20 = vpop.f32.mrf.mxu3 }
 0x8eb   : > { %v1979_v22 = vpop.f32.mrf.mxu1 }
 0x8ec   : > { %v1980_v24 = vadd.f32 %v1979_v22, %v1920_v21 }
 0x8ee   : > { %v1999_v25 = vadd.f32 %v1998_v20, %v1980_v24  ;;  %v2017_v26 = vpop.f32.mrf.mxu2 }
 0x8f0   : > { %v2018_v27 = vadd.f32 %v2017_v26, %v1999_v25 }
 0x8f2   : > { %2027 = vst.msk [vmem:[%s251_s16 + $0x8] sm:$0xff] %vm2025_vm0, %v2018_v27  ;;  %v2001_v30 = vpop.f32.mrf.mxu3 }
 0x8f3   : > { %v1982_v29 = vpop.f32.mrf.mxu1 }
 0x8f4   : > { %v1983_v31 = vadd.f32 %v1982_v29, %v1925_v28 }
 0x8f6   : > { %v2002_v2 = vadd.f32 %v2001_v30, %v1983_v31  ;;  %v2020_v32 = vpop.f32.mrf.mxu2 }
 0x8f8   : > { %v2021_v33 = vadd.f32 %v2020_v32, %v2002_v2 }
 0x8fa   : > { %2028 = vst.msk [vmem:[%s251_s16 + $0x10] sm:$0xff] %vm2025_vm0, %v2021_v33  ;;  %v2003_v38 = vpop.f32.mrf.mxu3 }
 0x8fb   : > { %v1984_v36 = vpop.f32.mrf.mxu1 }
 0x8fc   : > { %v1985_v37 = vadd.f32 %v1984_v36, %v1930_v35 }
 0x8fe   : > { %v2004_v39 = vadd.f32 %v2003_v38, %v1985_v37  ;;  %v2022_v40 = vpop.f32.mrf.mxu2 }
 0x900   : > { %v2023_v41 = vadd.f32 %v2022_v40, %v2004_v39 }
 0x902   : > { %2029 = vst.msk [vmem:[%s251_s16 + $0x18] sm:$0xff] %vm2025_vm0, %v2023_v41 }
 0x903 PF: > { %s16_s21 = sadd.s32 1, %s2592_s21  }
 0x904   : > { %p13_p4 = scmp.ge.s32.totalorder %s16_s21, 4  }
 0x906   :  { %15 = sbr.rel (!%p13_p4) target bundleno = 1 (0x1), region = 84 }

</bundles_post_ra>
